<compile_context>
chip_gen: v6e
topology: v6e:2x2x1
jax: 0.10.0
libtpu: 0.0.40
codegen_flags: <defaults>
</compile_context>

<pallas_src>
import functools

import jax
import jax.numpy as jnp
from jax import lax
from jax.experimental import pallas as pl
from jax.experimental.pallas import tpu as pltpu

C_OUT = 32    # conv1 out_channels
K = 3         # conv1 kernel_size
SB = 8        # in-kernel batch sub-tile (one f32 sublane group)
PC = 128      # conv position chunk (one lane group)


def _cnn_mlp_kernel(wc_ref,            # SMEM (K, C_OUT) f32  conv tap scalars
                    x_ref,             # VMEM (tb, l_pad) f32 input tile
                    bc_ref,            # VMEM (1, C_OUT)  f32 conv bias
                    w1_ref, b1_ref,    # VMEM (C_OUT, 64) mlp_dtype / (1, 64) f32
                    w2_ref, b2_ref,    # VMEM (64, 64)    mlp_dtype / (1, 64) f32
                    w3_ref, b3_ref,    # VMEM (1, 64) f32 / (1, 1) f32
                    o_ref,             # VMEM (tb, 1) f32 output tile
                    xr1_ref, xr2_ref,  # VMEM (tb, l_pad) f32 scratch (shifted x)
                    pooled_ref,        # VMEM (tb, C_OUT) f32 scratch
                    *, l_out, pc, n_full, n_tail, mlp_dtype):
    tb, l_pad = x_ref.shape
    neg_inf = jnp.float32(-jnp.inf)

    # One-time shifted copies of the tile: xr_k[b, t] == x[b, t + k] for every
    # valid t (< l_out).  This hoists the tap shifts out of the chunk loop so
    # all chunk reads below are lane-aligned.
    xv = x_ref[...]
    xr1_ref[:, : l_pad - 1] = xv[:, 1:]
    xr2_ref[:, : l_pad - 2] = xv[:, 2:]

    # Conv tap scalars, read once from SMEM (scalar splat inside the loops).
    # TODO(synk): bf16 conv taps would double VPU throughput on v6e/v7x only.
    w_tap = [[wc_ref[k, c] for c in range(C_OUT)] for k in range(K)]

    def chunk_update(accs, x0, x1, x2, valid):
        # accs[c]: (SB, pc) running max of channel c's pre-activation.
        new = []
        for c in range(C_OUT):
            z = x0 * w_tap[0][c] + x1 * w_tap[1][c] + x2 * w_tap[2][c]
            if valid is not None:
                z = jnp.where(valid, z, neg_inf)
            new.append(jnp.maximum(accs[c], z))
        return tuple(new)

    def sub_body(si, carry):
        r0 = pl.multiple_of(si * SB, SB)

        def load(ref, c0):
            return ref[pl.ds(r0, SB), pl.ds(c0, pc)]

        accs0 = tuple(jnp.full((SB, pc), neg_inf, jnp.float32)
                      for _ in range(C_OUT))

        # Chunks that are entirely valid (all positions < l_out): no masking.
        def chunk_body(ci, accs):
            c0 = pl.multiple_of(ci * pc, pc)
            return chunk_update(accs, load(x_ref, c0), load(xr1_ref, c0),
                                load(xr2_ref, c0), None)

        if n_full > 0:
            accs = lax.fori_loop(0, n_full, chunk_body, accs0,
                                 unroll=2 if n_full > 1 else 1)
        else:
            accs = accs0

        # Tail chunk(s): mask positions t >= l_out (shift wrap + lane padding).
        for ti in range(n_tail):
            c0 = (n_full + ti) * pc
            t_idx = c0 + lax.broadcasted_iota(jnp.int32, (1, pc), 1)
            accs = chunk_update(accs, load(x_ref, c0), load(xr1_ref, c0),
                                load(xr2_ref, c0), t_idx < l_out)

        # Per-channel lane max (XLU) -> (SB, C_OUT) raw pooled pre-activation.
        cols = [jnp.max(a, axis=-1, keepdims=True) for a in accs]
        pooled_ref[pl.ds(r0, SB), :] = jnp.concatenate(cols, axis=-1)
        return carry

    lax.fori_loop(0, tb // SB, sub_body, 0)

    # Bias + ReLU hoisted out of the position max (bias is t-invariant and
    # ReLU is monotone), then the MLP head once per tile on the MXU.
    pooled = jnp.maximum(pooled_ref[...] + bc_ref[...], 0.0)
    h1 = jnp.maximum(
        jnp.dot(pooled.astype(mlp_dtype), w1_ref[...],
                preferred_element_type=jnp.float32) + b1_ref[...], 0.0)
    h2 = jnp.maximum(
        jnp.dot(h1.astype(mlp_dtype), w2_ref[...],
                preferred_element_type=jnp.float32) + b2_ref[...], 0.0)
    # fc3 (64 -> 1): VPU multiply + lane reduce (an N=1 MXU matmul is wasteful).
    y = jnp.sum(h2 * w3_ref[...], axis=-1, keepdims=True)        # (tb, 1)
    o_ref[...] = y + b3_ref[...]


def cnn_mlp_forward(x_ncw, params, *, tile_b_max=1024, mlp_dtype=jnp.bfloat16,
                    vmem_budget_bytes=8 * 1024 * 1024):
    """x_ncw: (B, 1, L) float32 (PyTorch NCW).  Returns (B, 1) float32."""
    wc, bc, w1, b1, w2, b2, w3, b3 = params
    assert x_ncw.ndim == 3 and x_ncw.shape[1] == 1, x_ncw.shape
    assert wc.shape == (K, C_OUT), wc.shape
    x2d = x_ncw[:, 0, :]                       # in_channels == 1 -> (B, L)
    B, L = x2d.shape
    assert L >= K, f"Conv1d(kernel_size={K}) needs L >= {K}, got L={L}"
    l_out = L - K + 1

    # Position chunking: pad L to a lane-aligned width when chunked.
    if L <= PC:
        l_pad, pc = L, L
    else:
        l_pad, pc = pl.cdiv(L, PC) * PC, PC
    n_chunks = l_pad // pc
    n_full = l_out // pc                       # chunks with no invalid position
    n_tail = n_chunks - n_full                 # 1 or 2 masked tail chunks

    # Batch tile: multiple of SB, auto-sized against a VMEM budget.
    # Per batch row: 2x double-buffered x + 2 shifted-copy scratch ~ 16*l_pad B.
    tb = min(tile_b_max, max(SB, vmem_budget_bytes // (16 * l_pad)))
    tb = min(tb, pl.cdiv(B, SB) * SB)
    tb = max(SB, (tb // SB) * SB)

    pad_rows = tb - B if tb > B else 0
    pad_cols = l_pad - L
    if pad_rows or pad_cols:
        x2d = jnp.pad(x2d, ((0, pad_rows), (0, pad_cols)))
    b_pad = x2d.shape[0]
    grid = (pl.cdiv(b_pad, tb),)

    # Tiny MLP weights cast once here; activations cast in-kernel (f32
    # accumulation is kept via preferred_element_type).
    w1c = w1.astype(mlp_dtype)
    w2c = w2.astype(mlp_dtype)

    def resident(arr):                 # same block every step -> stays in VMEM
        return pl.BlockSpec(arr.shape, lambda i: (0, 0))

    kernel = functools.partial(_cnn_mlp_kernel, l_out=l_out, pc=pc,
                               n_full=n_full, n_tail=n_tail, mlp_dtype=mlp_dtype)

    flops = 2 * B * (l_out * C_OUT * K + C_OUT * 64 + 64 * 64 + 64)
    bytes_accessed = 4 * (B * L + B) + 4 * sum(
        a.size for a in (wc, bc, w1, b1, w2, b2, w3, b3))

    out = pl.pallas_call(
        kernel,
        out_shape=jax.ShapeDtypeStruct((b_pad, 1), jnp.float32),
        grid=grid,
        in_specs=[
            pl.BlockSpec(memory_space=pltpu.MemorySpace.SMEM),   # conv taps
            pl.BlockSpec((tb, l_pad), lambda i: (i, 0)),         # x tile
            resident(bc),
            resident(w1c), resident(b1),
            resident(w2c), resident(b2),
            resident(w3), resident(b3),
        ],
        out_specs=pl.BlockSpec((tb, 1), lambda i: (i, 0)),
        scratch_shapes=[
            pltpu.VMEM((tb, l_pad), jnp.float32),   # x shifted by 1
            pltpu.VMEM((tb, l_pad), jnp.float32),   # x shifted by 2
            pltpu.VMEM((tb, C_OUT), jnp.float32),   # pooled pre-activation
        ],
        compiler_params=pltpu.CompilerParams(
            dimension_semantics=("parallel",),
            vmem_limit_bytes=32 * 1024 * 1024),
        cost_estimate=pl.CostEstimate(flops=flops, transcendentals=0,
                                      bytes_accessed=bytes_accessed),
    )(wc, x2d, bc, w1c, b1, w2c, b2, w3, b3)
    return out[:B] if b_pad != B else out


def make_params(key):
    """Parameters in kernel layout (PyTorch correspondence in comments)."""
    ks = jax.random.split(key, 8)
    wc = 0.1 * jax.random.normal(ks[0], (K, C_OUT), jnp.float32)   # conv1.weight (32,1,3) -> (K,C)
    bc = 0.1 * jax.random.normal(ks[1], (1, C_OUT), jnp.float32)   # conv1.bias
    w1 = 0.1 * jax.random.normal(ks[2], (C_OUT, 64), jnp.float32)  # fc1.weight.T (in,out)
    b1 = 0.1 * jax.random.normal(ks[3], (1, 64), jnp.float32)      # fc1.bias
    w2 = 0.1 * jax.random.normal(ks[4], (64, 64), jnp.float32)     # fc2.weight.T
    b2 = 0.1 * jax.random.normal(ks[5], (1, 64), jnp.float32)      # fc2.bias
    w3 = 0.1 * jax.random.normal(ks[6], (1, 64), jnp.float32)      # fc3.weight (1,64)
    b3 = 0.1 * jax.random.normal(ks[7], (1, 1), jnp.float32)       # fc3.bias
    return (wc, bc, w1, b1, w2, b2, w3, b3)


def ref_forward(x_ncw, params):
    """Pure-JAX f32 reference mirroring the PyTorch forward."""
    wc, bc, w1, b1, w2, b2, w3, b3 = params
    x = x_ncw[:, 0, :]                                          # (B, L)
    L = x.shape[1]
    l_out = L - K + 1
    idx = jnp.arange(l_out)[:, None] + jnp.arange(K)[None, :]   # (l_out, K)
    windows = x[:, idx]                                         # (B, l_out, K)
    conv = jnp.einsum("blk,kc->blc", windows, wc) + bc          # (B, l_out, 32)
    conv = jnp.maximum(conv, 0.0)
    pooled = conv.max(axis=1)                                   # (B, 32)
    h1 = jnp.maximum(pooled @ w1 + b1, 0.0)
    h2 = jnp.maximum(h1 @ w2 + b2, 0.0)
    return h2 @ w3.T + b3


if __name__ == "__main__":
    # Full-f32 matmul precision for the pure-JAX reference (the exact-path
    # comparison below is tight); does not change the bf16 kernel path.
    jax.config.update("jax_default_matmul_precision", "highest")

    key = jax.random.PRNGKey(0)
    kx, kx2, kp = jax.random.split(key, 3)
    params = make_params(kp)

    # Small shape, matching nn.Conv1d(1, 32, 3) input layout (B, 1, L).
    B, L = 2, 16
    x = jax.random.normal(kx, (B, 1, L), jnp.float32)
    ref = ref_forward(x, params)

    # Exact-precision path (f32 MXU inputs): tight check against the reference.
    out_f32 = jax.block_until_ready(
        cnn_mlp_forward(x, params, mlp_dtype=jnp.float32))
    assert out_f32.shape == (B, 1), out_f32.shape
    assert jnp.allclose(out_f32, ref, atol=1e-5, rtol=1e-5), (out_f32, ref)

    # Default fast path (bf16 MXU inputs, f32 accumulation): looser tolerance.
    out_bf16 = jax.block_until_ready(cnn_mlp_forward(x, params))
    assert out_bf16.shape == (B, 1), out_bf16.shape
    assert jnp.allclose(out_bf16, ref, atol=2e-2, rtol=2e-2), (out_bf16, ref)

    # Larger shape: exercises lane padding, the chunked conv fori_loop,
    # in-kernel batch sub-tiling, and a multi-step grid with a partial tile.
    B2, L2 = 200, 300
    x2 = jax.random.normal(kx2, (B2, 1, L2), jnp.float32)
    ref2 = ref_forward(x2, params)
    out2 = jax.block_until_ready(
        cnn_mlp_forward(x2, params, mlp_dtype=jnp.float32, tile_b_max=64))
    assert out2.shape == (B2, 1), out2.shape
    assert jnp.allclose(out2, ref2, atol=2e-4, rtol=2e-4), float(
        jnp.max(jnp.abs(out2 - ref2)))

    print("KERNEL_OK")
</pallas_src>

<mosaic_0001>
module attributes {stable_mosaic.version = 11 : i64} {
  func.func @_cnn_mlp_kernel(%arg0: i32, %arg1: memref<3x32xf32, #tpu.memory_space<smem>>, %arg2: memref<8x16xf32, #tpu.memory_space<vmem>>, %arg3: memref<1x32xf32, #tpu.memory_space<vmem>>, %arg4: memref<32x64xf32, #tpu.memory_space<vmem>>, %arg5: memref<1x64xf32, #tpu.memory_space<vmem>>, %arg6: memref<64x64xf32, #tpu.memory_space<vmem>>, %arg7: memref<1x64xf32, #tpu.memory_space<vmem>>, %arg8: memref<1x64xf32, #tpu.memory_space<vmem>>, %arg9: memref<1x1xf32, #tpu.memory_space<vmem>>, %arg10: memref<8x1xf32, #tpu.memory_space<vmem>>, %arg11: memref<8x16xf32, #tpu.memory_space<vmem>>, %arg12: memref<8x16xf32, #tpu.memory_space<vmem>>, %arg13: memref<8x32xf32, #tpu.memory_space<vmem>>) attributes {dimension_semantics = [#tpu.dimension_semantics<parallel>], iteration_bounds = array<i64: 1>, scalar_prefetch = 0 : i64, scratch_operands = 3 : i64, tpu.core_type = #tpu.core_type<tc>, window_params = [{transform_indices = @transform_0, window_bounds = array<i64: 3, 32>}, {transform_indices = @transform_1, window_bounds = array<i64: 8, 16>}, {pipeline_mode = #tpu.pipeline_mode<synchronous>, transform_indices = @transform_2, window_bounds = array<i64: 1, 32>}, {pipeline_mode = #tpu.pipeline_mode<synchronous>, transform_indices = @transform_3, window_bounds = array<i64: 32, 64>}, {pipeline_mode = #tpu.pipeline_mode<synchronous>, transform_indices = @transform_4, window_bounds = array<i64: 1, 64>}, {pipeline_mode = #tpu.pipeline_mode<synchronous>, transform_indices = @transform_5, window_bounds = array<i64: 64, 64>}, {pipeline_mode = #tpu.pipeline_mode<synchronous>, transform_indices = @transform_6, window_bounds = array<i64: 1, 64>}, {pipeline_mode = #tpu.pipeline_mode<synchronous>, transform_indices = @transform_7, window_bounds = array<i64: 1, 64>}, {pipeline_mode = #tpu.pipeline_mode<synchronous>, transform_indices = @transform_8, window_bounds = array<i64: 1, 1>}, {transform_indices = @transform_9, window_bounds = array<i64: 8, 1>}]} {
    %c0 = arith.constant 0 : index
    %c0_0 = arith.constant 0 : index
    %0 = vector.load %arg2[%c0, %c0_0] : memref<8x16xf32, #tpu.memory_space<vmem>>, vector<8x16xf32>
    %1 = vector.extract_strided_slice %0 {offsets = [0, 1], sizes = [8, 15], strides = [1, 1]} : vector<8x16xf32> to vector<8x15xf32>
    %c0_1 = arith.constant 0 : index
    %c0_2 = arith.constant 0 : index
    %2 = vector.load %arg11[%c0_1, %c0_2] : memref<8x16xf32, #tpu.memory_space<vmem>>, vector<8x15xf32>
    tpu.vector_store %arg11[%c0_1, %c0_2], %1 {strides = array<i32>} : memref<8x16xf32, #tpu.memory_space<vmem>>, vector<8x15xf32>,
    %3 = vector.extract_strided_slice %0 {offsets = [0, 2], sizes = [8, 14], strides = [1, 1]} : vector<8x16xf32> to vector<8x14xf32>
    %c0_3 = arith.constant 0 : index
    %c0_4 = arith.constant 0 : index
    %4 = vector.load %arg12[%c0_3, %c0_4] : memref<8x16xf32, #tpu.memory_space<vmem>>, vector<8x14xf32>
    tpu.vector_store %arg12[%c0_3, %c0_4], %3 {strides = array<i32>} : memref<8x16xf32, #tpu.memory_space<vmem>>, vector<8x14xf32>,
    %c0_5 = arith.constant 0 : index
    %c0_6 = arith.constant 0 : index
    %5 = memref.load %arg1[%c0_5, %c0_6] : memref<3x32xf32, #tpu.memory_space<smem>>
    %c0_7 = arith.constant 0 : index
    %c1 = arith.constant 1 : index
    %6 = memref.load %arg1[%c0_7, %c1] : memref<3x32xf32, #tpu.memory_space<smem>>
    %c0_8 = arith.constant 0 : index
    %c2 = arith.constant 2 : index
    %7 = memref.load %arg1[%c0_8, %c2] : memref<3x32xf32, #tpu.memory_space<smem>>
    %c0_9 = arith.constant 0 : index
    %c3 = arith.constant 3 : index
    %8 = memref.load %arg1[%c0_9, %c3] : memref<3x32xf32, #tpu.memory_space<smem>>
    %c0_10 = arith.constant 0 : index
    %c4 = arith.constant 4 : index
    %9 = memref.load %arg1[%c0_10, %c4] : memref<3x32xf32, #tpu.memory_space<smem>>
    %c0_11 = arith.constant 0 : index
    %c5 = arith.constant 5 : index
    %10 = memref.load %arg1[%c0_11, %c5] : memref<3x32xf32, #tpu.memory_space<smem>>
    %c0_12 = arith.constant 0 : index
    %c6 = arith.constant 6 : index
    %11 = memref.load %arg1[%c0_12, %c6] : memref<3x32xf32, #tpu.memory_space<smem>>
    %c0_13 = arith.constant 0 : index
    %c7 = arith.constant 7 : index
    %12 = memref.load %arg1[%c0_13, %c7] : memref<3x32xf32, #tpu.memory_space<smem>>
    %c0_14 = arith.constant 0 : index
    %c8 = arith.constant 8 : index
    %13 = memref.load %arg1[%c0_14, %c8] : memref<3x32xf32, #tpu.memory_space<smem>>
    %c0_15 = arith.constant 0 : index
    %c9 = arith.constant 9 : index
    %14 = memref.load %arg1[%c0_15, %c9] : memref<3x32xf32, #tpu.memory_space<smem>>
    %c0_16 = arith.constant 0 : index
    %c10 = arith.constant 10 : index
    %15 = memref.load %arg1[%c0_16, %c10] : memref<3x32xf32, #tpu.memory_space<smem>>
    %c0_17 = arith.constant 0 : index
    %c11 = arith.constant 11 : index
    %16 = memref.load %arg1[%c0_17, %c11] : memref<3x32xf32, #tpu.memory_space<smem>>
    %c0_18 = arith.constant 0 : index
    %c12 = arith.constant 12 : index
    %17 = memref.load %arg1[%c0_18, %c12] : memref<3x32xf32, #tpu.memory_space<smem>>
    %c0_19 = arith.constant 0 : index
    %c13 = arith.constant 13 : index
    %18 = memref.load %arg1[%c0_19, %c13] : memref<3x32xf32, #tpu.memory_space<smem>>
    %c0_20 = arith.constant 0 : index
    %c14 = arith.constant 14 : index
    %19 = memref.load %arg1[%c0_20, %c14] : memref<3x32xf32, #tpu.memory_space<smem>>
    %c0_21 = arith.constant 0 : index
    %c15 = arith.constant 15 : index
    %20 = memref.load %arg1[%c0_21, %c15] : memref<3x32xf32, #tpu.memory_space<smem>>
    %c0_22 = arith.constant 0 : index
    %c16 = arith.constant 16 : index
    %21 = memref.load %arg1[%c0_22, %c16] : memref<3x32xf32, #tpu.memory_space<smem>>
    %c0_23 = arith.constant 0 : index
    %c17 = arith.constant 17 : index
    %22 = memref.load %arg1[%c0_23, %c17] : memref<3x32xf32, #tpu.memory_space<smem>>
    %c0_24 = arith.constant 0 : index
    %c18 = arith.constant 18 : index
    %23 = memref.load %arg1[%c0_24, %c18] : memref<3x32xf32, #tpu.memory_space<smem>>
    %c0_25 = arith.constant 0 : index
    %c19 = arith.constant 19 : index
    %24 = memref.load %arg1[%c0_25, %c19] : memref<3x32xf32, #tpu.memory_space<smem>>
    %c0_26 = arith.constant 0 : index
    %c20 = arith.constant 20 : index
    %25 = memref.load %arg1[%c0_26, %c20] : memref<3x32xf32, #tpu.memory_space<smem>>
    %c0_27 = arith.constant 0 : index
    %c21 = arith.constant 21 : index
    %26 = memref.load %arg1[%c0_27, %c21] : memref<3x32xf32, #tpu.memory_space<smem>>
    %c0_28 = arith.constant 0 : index
    %c22 = arith.constant 22 : index
    %27 = memref.load %arg1[%c0_28, %c22] : memref<3x32xf32, #tpu.memory_space<smem>>
    %c0_29 = arith.constant 0 : index
    %c23 = arith.constant 23 : index
    %28 = memref.load %arg1[%c0_29, %c23] : memref<3x32xf32, #tpu.memory_space<smem>>
    %c0_30 = arith.constant 0 : index
    %c24 = arith.constant 24 : index
    %29 = memref.load %arg1[%c0_30, %c24] : memref<3x32xf32, #tpu.memory_space<smem>>
    %c0_31 = arith.constant 0 : index
    %c25 = arith.constant 25 : index
    %30 = memref.load %arg1[%c0_31, %c25] : memref<3x32xf32, #tpu.memory_space<smem>>
    %c0_32 = arith.constant 0 : index
    %c26 = arith.constant 26 : index
    %31 = memref.load %arg1[%c0_32, %c26] : memref<3x32xf32, #tpu.memory_space<smem>>
    %c0_33 = arith.constant 0 : index
    %c27 = arith.constant 27 : index
    %32 = memref.load %arg1[%c0_33, %c27] : memref<3x32xf32, #tpu.memory_space<smem>>
    %c0_34 = arith.constant 0 : index
    %c28 = arith.constant 28 : index
    %33 = memref.load %arg1[%c0_34, %c28] : memref<3x32xf32, #tpu.memory_space<smem>>
    %c0_35 = arith.constant 0 : index
    %c29 = arith.constant 29 : index
    %34 = memref.load %arg1[%c0_35, %c29] : memref<3x32xf32, #tpu.memory_space<smem>>
    %c0_36 = arith.constant 0 : index
    %c30 = arith.constant 30 : index
    %35 = memref.load %arg1[%c0_36, %c30] : memref<3x32xf32, #tpu.memory_space<smem>>
    %c0_37 = arith.constant 0 : index
    %c31 = arith.constant 31 : index
    %36 = memref.load %arg1[%c0_37, %c31] : memref<3x32xf32, #tpu.memory_space<smem>>
    %c1_38 = arith.constant 1 : index
    %c0_39 = arith.constant 0 : index
    %37 = memref.load %arg1[%c1_38, %c0_39] : memref<3x32xf32, #tpu.memory_space<smem>>
    %c1_40 = arith.constant 1 : index
    %c1_41 = arith.constant 1 : index
    %38 = memref.load %arg1[%c1_40, %c1_41] : memref<3x32xf32, #tpu.memory_space<smem>>
    %c1_42 = arith.constant 1 : index
    %c2_43 = arith.constant 2 : index
    %39 = memref.load %arg1[%c1_42, %c2_43] : memref<3x32xf32, #tpu.memory_space<smem>>
    %c1_44 = arith.constant 1 : index
    %c3_45 = arith.constant 3 : index
    %40 = memref.load %arg1[%c1_44, %c3_45] : memref<3x32xf32, #tpu.memory_space<smem>>
    %c1_46 = arith.constant 1 : index
    %c4_47 = arith.constant 4 : index
    %41 = memref.load %arg1[%c1_46, %c4_47] : memref<3x32xf32, #tpu.memory_space<smem>>
    %c1_48 = arith.constant 1 : index
    %c5_49 = arith.constant 5 : index
    %42 = memref.load %arg1[%c1_48, %c5_49] : memref<3x32xf32, #tpu.memory_space<smem>>
    %c1_50 = arith.constant 1 : index
    %c6_51 = arith.constant 6 : index
    %43 = memref.load %arg1[%c1_50, %c6_51] : memref<3x32xf32, #tpu.memory_space<smem>>
    %c1_52 = arith.constant 1 : index
    %c7_53 = arith.constant 7 : index
    %44 = memref.load %arg1[%c1_52, %c7_53] : memref<3x32xf32, #tpu.memory_space<smem>>
    %c1_54 = arith.constant 1 : index
    %c8_55 = arith.constant 8 : index
    %45 = memref.load %arg1[%c1_54, %c8_55] : memref<3x32xf32, #tpu.memory_space<smem>>
    %c1_56 = arith.constant 1 : index
    %c9_57 = arith.constant 9 : index
    %46 = memref.load %arg1[%c1_56, %c9_57] : memref<3x32xf32, #tpu.memory_space<smem>>
    %c1_58 = arith.constant 1 : index
    %c10_59 = arith.constant 10 : index
    %47 = memref.load %arg1[%c1_58, %c10_59] : memref<3x32xf32, #tpu.memory_space<smem>>
    %c1_60 = arith.constant 1 : index
    %c11_61 = arith.constant 11 : index
    %48 = memref.load %arg1[%c1_60, %c11_61] : memref<3x32xf32, #tpu.memory_space<smem>>
    %c1_62 = arith.constant 1 : index
    %c12_63 = arith.constant 12 : index
    %49 = memref.load %arg1[%c1_62, %c12_63] : memref<3x32xf32, #tpu.memory_space<smem>>
    %c1_64 = arith.constant 1 : index
    %c13_65 = arith.constant 13 : index
    %50 = memref.load %arg1[%c1_64, %c13_65] : memref<3x32xf32, #tpu.memory_space<smem>>
    %c1_66 = arith.constant 1 : index
    %c14_67 = arith.constant 14 : index
    %51 = memref.load %arg1[%c1_66, %c14_67] : memref<3x32xf32, #tpu.memory_space<smem>>
    %c1_68 = arith.constant 1 : index
    %c15_69 = arith.constant 15 : index
    %52 = memref.load %arg1[%c1_68, %c15_69] : memref<3x32xf32, #tpu.memory_space<smem>>
    %c1_70 = arith.constant 1 : index
    %c16_71 = arith.constant 16 : index
    %53 = memref.load %arg1[%c1_70, %c16_71] : memref<3x32xf32, #tpu.memory_space<smem>>
    %c1_72 = arith.constant 1 : index
    %c17_73 = arith.constant 17 : index
    %54 = memref.load %arg1[%c1_72, %c17_73] : memref<3x32xf32, #tpu.memory_space<smem>>
    %c1_74 = arith.constant 1 : index
    %c18_75 = arith.constant 18 : index
    %55 = memref.load %arg1[%c1_74, %c18_75] : memref<3x32xf32, #tpu.memory_space<smem>>
    %c1_76 = arith.constant 1 : index
    %c19_77 = arith.constant 19 : index
    %56 = memref.load %arg1[%c1_76, %c19_77] : memref<3x32xf32, #tpu.memory_space<smem>>
    %c1_78 = arith.constant 1 : index
    %c20_79 = arith.constant 20 : index
    %57 = memref.load %arg1[%c1_78, %c20_79] : memref<3x32xf32, #tpu.memory_space<smem>>
    %c1_80 = arith.constant 1 : index
    %c21_81 = arith.constant 21 : index
    %58 = memref.load %arg1[%c1_80, %c21_81] : memref<3x32xf32, #tpu.memory_space<smem>>
    %c1_82 = arith.constant 1 : index
    %c22_83 = arith.constant 22 : index
    %59 = memref.load %arg1[%c1_82, %c22_83] : memref<3x32xf32, #tpu.memory_space<smem>>
    %c1_84 = arith.constant 1 : index
    %c23_85 = arith.constant 23 : index
    %60 = memref.load %arg1[%c1_84, %c23_85] : memref<3x32xf32, #tpu.memory_space<smem>>
    %c1_86 = arith.constant 1 : index
    %c24_87 = arith.constant 24 : index
    %61 = memref.load %arg1[%c1_86, %c24_87] : memref<3x32xf32, #tpu.memory_space<smem>>
    %c1_88 = arith.constant 1 : index
    %c25_89 = arith.constant 25 : index
    %62 = memref.load %arg1[%c1_88, %c25_89] : memref<3x32xf32, #tpu.memory_space<smem>>
    %c1_90 = arith.constant 1 : index
    %c26_91 = arith.constant 26 : index
    %63 = memref.load %arg1[%c1_90, %c26_91] : memref<3x32xf32, #tpu.memory_space<smem>>
    %c1_92 = arith.constant 1 : index
    %c27_93 = arith.constant 27 : index
    %64 = memref.load %arg1[%c1_92, %c27_93] : memref<3x32xf32, #tpu.memory_space<smem>>
    %c1_94 = arith.constant 1 : index
    %c28_95 = arith.constant 28 : index
    %65 = memref.load %arg1[%c1_94, %c28_95] : memref<3x32xf32, #tpu.memory_space<smem>>
    %c1_96 = arith.constant 1 : index
    %c29_97 = arith.constant 29 : index
    %66 = memref.load %arg1[%c1_96, %c29_97] : memref<3x32xf32, #tpu.memory_space<smem>>
    %c1_98 = arith.constant 1 : index
    %c30_99 = arith.constant 30 : index
    %67 = memref.load %arg1[%c1_98, %c30_99] : memref<3x32xf32, #tpu.memory_space<smem>>
    %c1_100 = arith.constant 1 : index
    %c31_101 = arith.constant 31 : index
    %68 = memref.load %arg1[%c1_100, %c31_101] : memref<3x32xf32, #tpu.memory_space<smem>>
    %c2_102 = arith.constant 2 : index
    %c0_103 = arith.constant 0 : index
    %69 = memref.load %arg1[%c2_102, %c0_103] : memref<3x32xf32, #tpu.memory_space<smem>>
    %c2_104 = arith.constant 2 : index
    %c1_105 = arith.constant 1 : index
    %70 = memref.load %arg1[%c2_104, %c1_105] : memref<3x32xf32, #tpu.memory_space<smem>>
    %c2_106 = arith.constant 2 : index
    %c2_107 = arith.constant 2 : index
    %71 = memref.load %arg1[%c2_106, %c2_107] : memref<3x32xf32, #tpu.memory_space<smem>>
    %c2_108 = arith.constant 2 : index
    %c3_109 = arith.constant 3 : index
    %72 = memref.load %arg1[%c2_108, %c3_109] : memref<3x32xf32, #tpu.memory_space<smem>>
    %c2_110 = arith.constant 2 : index
    %c4_111 = arith.constant 4 : index
    %73 = memref.load %arg1[%c2_110, %c4_111] : memref<3x32xf32, #tpu.memory_space<smem>>
    %c2_112 = arith.constant 2 : index
    %c5_113 = arith.constant 5 : index
    %74 = memref.load %arg1[%c2_112, %c5_113] : memref<3x32xf32, #tpu.memory_space<smem>>
    %c2_114 = arith.constant 2 : index
    %c6_115 = arith.constant 6 : index
    %75 = memref.load %arg1[%c2_114, %c6_115] : memref<3x32xf32, #tpu.memory_space<smem>>
    %c2_116 = arith.constant 2 : index
    %c7_117 = arith.constant 7 : index
    %76 = memref.load %arg1[%c2_116, %c7_117] : memref<3x32xf32, #tpu.memory_space<smem>>
    %c2_118 = arith.constant 2 : index
    %c8_119 = arith.constant 8 : index
    %77 = memref.load %arg1[%c2_118, %c8_119] : memref<3x32xf32, #tpu.memory_space<smem>>
    %c2_120 = arith.constant 2 : index
    %c9_121 = arith.constant 9 : index
    %78 = memref.load %arg1[%c2_120, %c9_121] : memref<3x32xf32, #tpu.memory_space<smem>>
    %c2_122 = arith.constant 2 : index
    %c10_123 = arith.constant 10 : index
    %79 = memref.load %arg1[%c2_122, %c10_123] : memref<3x32xf32, #tpu.memory_space<smem>>
    %c2_124 = arith.constant 2 : index
    %c11_125 = arith.constant 11 : index
    %80 = memref.load %arg1[%c2_124, %c11_125] : memref<3x32xf32, #tpu.memory_space<smem>>
    %c2_126 = arith.constant 2 : index
    %c12_127 = arith.constant 12 : index
    %81 = memref.load %arg1[%c2_126, %c12_127] : memref<3x32xf32, #tpu.memory_space<smem>>
    %c2_128 = arith.constant 2 : index
    %c13_129 = arith.constant 13 : index
    %82 = memref.load %arg1[%c2_128, %c13_129] : memref<3x32xf32, #tpu.memory_space<smem>>
    %c2_130 = arith.constant 2 : index
    %c14_131 = arith.constant 14 : index
    %83 = memref.load %arg1[%c2_130, %c14_131] : memref<3x32xf32, #tpu.memory_space<smem>>
    %c2_132 = arith.constant 2 : index
    %c15_133 = arith.constant 15 : index
    %84 = memref.load %arg1[%c2_132, %c15_133] : memref<3x32xf32, #tpu.memory_space<smem>>
    %c2_134 = arith.constant 2 : index
    %c16_135 = arith.constant 16 : index
    %85 = memref.load %arg1[%c2_134, %c16_135] : memref<3x32xf32, #tpu.memory_space<smem>>
    %c2_136 = arith.constant 2 : index
    %c17_137 = arith.constant 17 : index
    %86 = memref.load %arg1[%c2_136, %c17_137] : memref<3x32xf32, #tpu.memory_space<smem>>
    %c2_138 = arith.constant 2 : index
    %c18_139 = arith.constant 18 : index
    %87 = memref.load %arg1[%c2_138, %c18_139] : memref<3x32xf32, #tpu.memory_space<smem>>
    %c2_140 = arith.constant 2 : index
    %c19_141 = arith.constant 19 : index
    %88 = memref.load %arg1[%c2_140, %c19_141] : memref<3x32xf32, #tpu.memory_space<smem>>
    %c2_142 = arith.constant 2 : index
    %c20_143 = arith.constant 20 : index
    %89 = memref.load %arg1[%c2_142, %c20_143] : memref<3x32xf32, #tpu.memory_space<smem>>
    %c2_144 = arith.constant 2 : index
    %c21_145 = arith.constant 21 : index
    %90 = memref.load %arg1[%c2_144, %c21_145] : memref<3x32xf32, #tpu.memory_space<smem>>
    %c2_146 = arith.constant 2 : index
    %c22_147 = arith.constant 22 : index
    %91 = memref.load %arg1[%c2_146, %c22_147] : memref<3x32xf32, #tpu.memory_space<smem>>
    %c2_148 = arith.constant 2 : index
    %c23_149 = arith.constant 23 : index
    %92 = memref.load %arg1[%c2_148, %c23_149] : memref<3x32xf32, #tpu.memory_space<smem>>
    %c2_150 = arith.constant 2 : index
    %c24_151 = arith.constant 24 : index
    %93 = memref.load %arg1[%c2_150, %c24_151] : memref<3x32xf32, #tpu.memory_space<smem>>
    %c2_152 = arith.constant 2 : index
    %c25_153 = arith.constant 25 : index
    %94 = memref.load %arg1[%c2_152, %c25_153] : memref<3x32xf32, #tpu.memory_space<smem>>
    %c2_154 = arith.constant 2 : index
    %c26_155 = arith.constant 26 : index
    %95 = memref.load %arg1[%c2_154, %c26_155] : memref<3x32xf32, #tpu.memory_space<smem>>
    %c2_156 = arith.constant 2 : index
    %c27_157 = arith.constant 27 : index
    %96 = memref.load %arg1[%c2_156, %c27_157] : memref<3x32xf32, #tpu.memory_space<smem>>
    %c2_158 = arith.constant 2 : index
    %c28_159 = arith.constant 28 : index
    %97 = memref.load %arg1[%c2_158, %c28_159] : memref<3x32xf32, #tpu.memory_space<smem>>
    %c2_160 = arith.constant 2 : index
    %c29_161 = arith.constant 29 : index
    %98 = memref.load %arg1[%c2_160, %c29_161] : memref<3x32xf32, #tpu.memory_space<smem>>
    %c2_162 = arith.constant 2 : index
    %c30_163 = arith.constant 30 : index
    %99 = memref.load %arg1[%c2_162, %c30_163] : memref<3x32xf32, #tpu.memory_space<smem>>
    %c2_164 = arith.constant 2 : index
    %c31_165 = arith.constant 31 : index
    %100 = memref.load %arg1[%c2_164, %c31_165] : memref<3x32xf32, #tpu.memory_space<smem>>
    %cst = arith.constant 0xFF800000 : f32
    %c0_i32 = arith.constant 0 : i32
    %c8_i32 = arith.constant 8 : i32
    %101 = arith.muli %c0_i32, %c8_i32 : i32
    %102 = tpu.assume_multiple %101, 8 : i32
    %103 = vector.broadcast %cst : f32 to vector<8x16xf32>
    %104 = vector.broadcast %cst : f32 to vector<8x16xf32>
    %105 = vector.broadcast %cst : f32 to vector<8x16xf32>
    %106 = vector.broadcast %cst : f32 to vector<8x16xf32>
    %107 = vector.broadcast %cst : f32 to vector<8x16xf32>
    %108 = vector.broadcast %cst : f32 to vector<8x16xf32>
    %109 = vector.broadcast %cst : f32 to vector<8x16xf32>
    %110 = vector.broadcast %cst : f32 to vector<8x16xf32>
    %111 = vector.broadcast %cst : f32 to vector<8x16xf32>
    %112 = vector.broadcast %cst : f32 to vector<8x16xf32>
    %113 = vector.broadcast %cst : f32 to vector<8x16xf32>
    %114 = vector.broadcast %cst : f32 to vector<8x16xf32>
    %115 = vector.broadcast %cst : f32 to vector<8x16xf32>
    %116 = vector.broadcast %cst : f32 to vector<8x16xf32>
    %117 = vector.broadcast %cst : f32 to vector<8x16xf32>
    %118 = vector.broadcast %cst : f32 to vector<8x16xf32>
    %119 = vector.broadcast %cst : f32 to vector<8x16xf32>
    %120 = vector.broadcast %cst : f32 to vector<8x16xf32>
    %121 = vector.broadcast %cst : f32 to vector<8x16xf32>
    %122 = vector.broadcast %cst : f32 to vector<8x16xf32>
    %123 = vector.broadcast %cst : f32 to vector<8x16xf32>
    %124 = vector.broadcast %cst : f32 to vector<8x16xf32>
    %125 = vector.broadcast %cst : f32 to vector<8x16xf32>
    %126 = vector.broadcast %cst : f32 to vector<8x16xf32>
    %127 = vector.broadcast %cst : f32 to vector<8x16xf32>
    %128 = vector.broadcast %cst : f32 to vector<8x16xf32>
    %129 = vector.broadcast %cst : f32 to vector<8x16xf32>
    %130 = vector.broadcast %cst : f32 to vector<8x16xf32>
    %131 = vector.broadcast %cst : f32 to vector<8x16xf32>
    %132 = vector.broadcast %cst : f32 to vector<8x16xf32>
    %133 = vector.broadcast %cst : f32 to vector<8x16xf32>
    %134 = vector.broadcast %cst : f32 to vector<8x16xf32>
    %135 = tpu.iota {dimensions = array<i32: 1>} : vector<1x16xi32>
    %c0_i32_166 = arith.constant 0 : i32
    %136 = vector.broadcast %c0_i32_166 : i32 to vector<1x16xi32>
    %137 = arith.addi %136, %135 : vector<1x16xi32>
    %138 = arith.index_cast %102 : i32 to index
    %c0_167 = arith.constant 0 : index
    %139 = vector.load %arg2[%138, %c0_167] : memref<8x16xf32, #tpu.memory_space<vmem>>, vector<8x16xf32>
    %140 = arith.index_cast %102 : i32 to index
    %c0_168 = arith.constant 0 : index
    %141 = vector.load %arg11[%140, %c0_168] : memref<8x16xf32, #tpu.memory_space<vmem>>, vector<8x16xf32>
    %142 = arith.index_cast %102 : i32 to index
    %c0_169 = arith.constant 0 : index
    %143 = vector.load %arg12[%142, %c0_169] : memref<8x16xf32, #tpu.memory_space<vmem>>, vector<8x16xf32>
    %c14_i32 = arith.constant 14 : i32
    %144 = vector.broadcast %c14_i32 : i32 to vector<1x16xi32>
    %145 = arith.cmpi slt, %137, %144 : vector<1x16xi32>
    %146 = vector.broadcast %5 : f32 to vector<8x16xf32>
    %147 = arith.mulf %139, %146 : vector<8x16xf32>
    %148 = vector.broadcast %37 : f32 to vector<8x16xf32>
    %149 = arith.mulf %141, %148 : vector<8x16xf32>
    %150 = arith.addf %147, %149 : vector<8x16xf32>
    %151 = vector.broadcast %69 : f32 to vector<8x16xf32>
    %152 = arith.mulf %143, %151 : vector<8x16xf32>
    %153 = arith.addf %150, %152 : vector<8x16xf32>
    %154 = vector.shape_cast %145 : vector<1x16xi1> to vector<1x16xi1>
    %155 = vector.broadcast %154 : vector<1x16xi1> to vector<8x16xi1>
    %156 = vector.broadcast %cst : f32 to vector<8x16xf32>
    %157 = arith.select %155, %153, %156 : vector<8x16xi1>, vector<8x16xf32>
    %158 = arith.maximumf %103, %157 : vector<8x16xf32>
    %159 = vector.broadcast %6 : f32 to vector<8x16xf32>
    %160 = arith.mulf %139, %159 : vector<8x16xf32>
    %161 = vector.broadcast %38 : f32 to vector<8x16xf32>
    %162 = arith.mulf %141, %161 : vector<8x16xf32>
    %163 = arith.addf %160, %162 : vector<8x16xf32>
    %164 = vector.broadcast %70 : f32 to vector<8x16xf32>
    %165 = arith.mulf %143, %164 : vector<8x16xf32>
    %166 = arith.addf %163, %165 : vector<8x16xf32>
    %167 = vector.shape_cast %145 : vector<1x16xi1> to vector<1x16xi1>
    %168 = vector.broadcast %167 : vector<1x16xi1> to vector<8x16xi1>
    %169 = vector.broadcast %cst : f32 to vector<8x16xf32>
    %170 = arith.select %168, %166, %169 : vector<8x16xi1>, vector<8x16xf32>
    %171 = arith.maximumf %104, %170 : vector<8x16xf32>
    %172 = vector.broadcast %7 : f32 to vector<8x16xf32>
    %173 = arith.mulf %139, %172 : vector<8x16xf32>
    %174 = vector.broadcast %39 : f32 to vector<8x16xf32>
    %175 = arith.mulf %141, %174 : vector<8x16xf32>
    %176 = arith.addf %173, %175 : vector<8x16xf32>
    %177 = vector.broadcast %71 : f32 to vector<8x16xf32>
    %178 = arith.mulf %143, %177 : vector<8x16xf32>
    %179 = arith.addf %176, %178 : vector<8x16xf32>
    %180 = vector.shape_cast %145 : vector<1x16xi1> to vector<1x16xi1>
    %181 = vector.broadcast %180 : vector<1x16xi1> to vector<8x16xi1>
    %182 = vector.broadcast %cst : f32 to vector<8x16xf32>
    %183 = arith.select %181, %179, %182 : vector<8x16xi1>, vector<8x16xf32>
    %184 = arith.maximumf %105, %183 : vector<8x16xf32>
    %185 = vector.broadcast %8 : f32 to vector<8x16xf32>
    %186 = arith.mulf %139, %185 : vector<8x16xf32>
    %187 = vector.broadcast %40 : f32 to vector<8x16xf32>
    %188 = arith.mulf %141, %187 : vector<8x16xf32>
    %189 = arith.addf %186, %188 : vector<8x16xf32>
    %190 = vector.broadcast %72 : f32 to vector<8x16xf32>
    %191 = arith.mulf %143, %190 : vector<8x16xf32>
    %192 = arith.addf %189, %191 : vector<8x16xf32>
    %193 = vector.shape_cast %145 : vector<1x16xi1> to vector<1x16xi1>
    %194 = vector.broadcast %193 : vector<1x16xi1> to vector<8x16xi1>
    %195 = vector.broadcast %cst : f32 to vector<8x16xf32>
    %196 = arith.select %194, %192, %195 : vector<8x16xi1>, vector<8x16xf32>
    %197 = arith.maximumf %106, %196 : vector<8x16xf32>
    %198 = vector.broadcast %9 : f32 to vector<8x16xf32>
    %199 = arith.mulf %139, %198 : vector<8x16xf32>
    %200 = vector.broadcast %41 : f32 to vector<8x16xf32>
    %201 = arith.mulf %141, %200 : vector<8x16xf32>
    %202 = arith.addf %199, %201 : vector<8x16xf32>
    %203 = vector.broadcast %73 : f32 to vector<8x16xf32>
    %204 = arith.mulf %143, %203 : vector<8x16xf32>
    %205 = arith.addf %202, %204 : vector<8x16xf32>
    %206 = vector.shape_cast %145 : vector<1x16xi1> to vector<1x16xi1>
    %207 = vector.broadcast %206 : vector<1x16xi1> to vector<8x16xi1>
    %208 = vector.broadcast %cst : f32 to vector<8x16xf32>
    %209 = arith.select %207, %205, %208 : vector<8x16xi1>, vector<8x16xf32>
    %210 = arith.maximumf %107, %209 : vector<8x16xf32>
    %211 = vector.broadcast %10 : f32 to vector<8x16xf32>
    %212 = arith.mulf %139, %211 : vector<8x16xf32>
    %213 = vector.broadcast %42 : f32 to vector<8x16xf32>
    %214 = arith.mulf %141, %213 : vector<8x16xf32>
    %215 = arith.addf %212, %214 : vector<8x16xf32>
    %216 = vector.broadcast %74 : f32 to vector<8x16xf32>
    %217 = arith.mulf %143, %216 : vector<8x16xf32>
    %218 = arith.addf %215, %217 : vector<8x16xf32>
    %219 = vector.shape_cast %145 : vector<1x16xi1> to vector<1x16xi1>
    %220 = vector.broadcast %219 : vector<1x16xi1> to vector<8x16xi1>
    %221 = vector.broadcast %cst : f32 to vector<8x16xf32>
    %222 = arith.select %220, %218, %221 : vector<8x16xi1>, vector<8x16xf32>
    %223 = arith.maximumf %108, %222 : vector<8x16xf32>
    %224 = vector.broadcast %11 : f32 to vector<8x16xf32>
    %225 = arith.mulf %139, %224 : vector<8x16xf32>
    %226 = vector.broadcast %43 : f32 to vector<8x16xf32>
    %227 = arith.mulf %141, %226 : vector<8x16xf32>
    %228 = arith.addf %225, %227 : vector<8x16xf32>
    %229 = vector.broadcast %75 : f32 to vector<8x16xf32>
    %230 = arith.mulf %143, %229 : vector<8x16xf32>
    %231 = arith.addf %228, %230 : vector<8x16xf32>
    %232 = vector.shape_cast %145 : vector<1x16xi1> to vector<1x16xi1>
    %233 = vector.broadcast %232 : vector<1x16xi1> to vector<8x16xi1>
    %234 = vector.broadcast %cst : f32 to vector<8x16xf32>
    %235 = arith.select %233, %231, %234 : vector<8x16xi1>, vector<8x16xf32>
    %236 = arith.maximumf %109, %235 : vector<8x16xf32>
    %237 = vector.broadcast %12 : f32 to vector<8x16xf32>
    %238 = arith.mulf %139, %237 : vector<8x16xf32>
    %239 = vector.broadcast %44 : f32 to vector<8x16xf32>
    %240 = arith.mulf %141, %239 : vector<8x16xf32>
    %241 = arith.addf %238, %240 : vector<8x16xf32>
    %242 = vector.broadcast %76 : f32 to vector<8x16xf32>
    %243 = arith.mulf %143, %242 : vector<8x16xf32>
    %244 = arith.addf %241, %243 : vector<8x16xf32>
    %245 = vector.shape_cast %145 : vector<1x16xi1> to vector<1x16xi1>
    %246 = vector.broadcast %245 : vector<1x16xi1> to vector<8x16xi1>
    %247 = vector.broadcast %cst : f32 to vector<8x16xf32>
    %248 = arith.select %246, %244, %247 : vector<8x16xi1>, vector<8x16xf32>
    %249 = arith.maximumf %110, %248 : vector<8x16xf32>
    %250 = vector.broadcast %13 : f32 to vector<8x16xf32>
    %251 = arith.mulf %139, %250 : vector<8x16xf32>
    %252 = vector.broadcast %45 : f32 to vector<8x16xf32>
    %253 = arith.mulf %141, %252 : vector<8x16xf32>
    %254 = arith.addf %251, %253 : vector<8x16xf32>
    %255 = vector.broadcast %77 : f32 to vector<8x16xf32>
    %256 = arith.mulf %143, %255 : vector<8x16xf32>
    %257 = arith.addf %254, %256 : vector<8x16xf32>
    %258 = vector.shape_cast %145 : vector<1x16xi1> to vector<1x16xi1>
    %259 = vector.broadcast %258 : vector<1x16xi1> to vector<8x16xi1>
    %260 = vector.broadcast %cst : f32 to vector<8x16xf32>
    %261 = arith.select %259, %257, %260 : vector<8x16xi1>, vector<8x16xf32>
    %262 = arith.maximumf %111, %261 : vector<8x16xf32>
    %263 = vector.broadcast %14 : f32 to vector<8x16xf32>
    %264 = arith.mulf %139, %263 : vector<8x16xf32>
    %265 = vector.broadcast %46 : f32 to vector<8x16xf32>
    %266 = arith.mulf %141, %265 : vector<8x16xf32>
    %267 = arith.addf %264, %266 : vector<8x16xf32>
    %268 = vector.broadcast %78 : f32 to vector<8x16xf32>
    %269 = arith.mulf %143, %268 : vector<8x16xf32>
    %270 = arith.addf %267, %269 : vector<8x16xf32>
    %271 = vector.shape_cast %145 : vector<1x16xi1> to vector<1x16xi1>
    %272 = vector.broadcast %271 : vector<1x16xi1> to vector<8x16xi1>
    %273 = vector.broadcast %cst : f32 to vector<8x16xf32>
    %274 = arith.select %272, %270, %273 : vector<8x16xi1>, vector<8x16xf32>
    %275 = arith.maximumf %112, %274 : vector<8x16xf32>
    %276 = vector.broadcast %15 : f32 to vector<8x16xf32>
    %277 = arith.mulf %139, %276 : vector<8x16xf32>
    %278 = vector.broadcast %47 : f32 to vector<8x16xf32>
    %279 = arith.mulf %141, %278 : vector<8x16xf32>
    %280 = arith.addf %277, %279 : vector<8x16xf32>
    %281 = vector.broadcast %79 : f32 to vector<8x16xf32>
    %282 = arith.mulf %143, %281 : vector<8x16xf32>
    %283 = arith.addf %280, %282 : vector<8x16xf32>
    %284 = vector.shape_cast %145 : vector<1x16xi1> to vector<1x16xi1>
    %285 = vector.broadcast %284 : vector<1x16xi1> to vector<8x16xi1>
    %286 = vector.broadcast %cst : f32 to vector<8x16xf32>
    %287 = arith.select %285, %283, %286 : vector<8x16xi1>, vector<8x16xf32>
    %288 = arith.maximumf %113, %287 : vector<8x16xf32>
    %289 = vector.broadcast %16 : f32 to vector<8x16xf32>
    %290 = arith.mulf %139, %289 : vector<8x16xf32>
    %291 = vector.broadcast %48 : f32 to vector<8x16xf32>
    %292 = arith.mulf %141, %291 : vector<8x16xf32>
    %293 = arith.addf %290, %292 : vector<8x16xf32>
    %294 = vector.broadcast %80 : f32 to vector<8x16xf32>
    %295 = arith.mulf %143, %294 : vector<8x16xf32>
    %296 = arith.addf %293, %295 : vector<8x16xf32>
    %297 = vector.shape_cast %145 : vector<1x16xi1> to vector<1x16xi1>
    %298 = vector.broadcast %297 : vector<1x16xi1> to vector<8x16xi1>
    %299 = vector.broadcast %cst : f32 to vector<8x16xf32>
    %300 = arith.select %298, %296, %299 : vector<8x16xi1>, vector<8x16xf32>
    %301 = arith.maximumf %114, %300 : vector<8x16xf32>
    %302 = vector.broadcast %17 : f32 to vector<8x16xf32>
    %303 = arith.mulf %139, %302 : vector<8x16xf32>
    %304 = vector.broadcast %49 : f32 to vector<8x16xf32>
    %305 = arith.mulf %141, %304 : vector<8x16xf32>
    %306 = arith.addf %303, %305 : vector<8x16xf32>
    %307 = vector.broadcast %81 : f32 to vector<8x16xf32>
    %308 = arith.mulf %143, %307 : vector<8x16xf32>
    %309 = arith.addf %306, %308 : vector<8x16xf32>
    %310 = vector.shape_cast %145 : vector<1x16xi1> to vector<1x16xi1>
    %311 = vector.broadcast %310 : vector<1x16xi1> to vector<8x16xi1>
    %312 = vector.broadcast %cst : f32 to vector<8x16xf32>
    %313 = arith.select %311, %309, %312 : vector<8x16xi1>, vector<8x16xf32>
    %314 = arith.maximumf %115, %313 : vector<8x16xf32>
    %315 = vector.broadcast %18 : f32 to vector<8x16xf32>
    %316 = arith.mulf %139, %315 : vector<8x16xf32>
    %317 = vector.broadcast %50 : f32 to vector<8x16xf32>
    %318 = arith.mulf %141, %317 : vector<8x16xf32>
    %319 = arith.addf %316, %318 : vector<8x16xf32>
    %320 = vector.broadcast %82 : f32 to vector<8x16xf32>
    %321 = arith.mulf %143, %320 : vector<8x16xf32>
    %322 = arith.addf %319, %321 : vector<8x16xf32>
    %323 = vector.shape_cast %145 : vector<1x16xi1> to vector<1x16xi1>
    %324 = vector.broadcast %323 : vector<1x16xi1> to vector<8x16xi1>
    %325 = vector.broadcast %cst : f32 to vector<8x16xf32>
    %326 = arith.select %324, %322, %325 : vector<8x16xi1>, vector<8x16xf32>
    %327 = arith.maximumf %116, %326 : vector<8x16xf32>
    %328 = vector.broadcast %19 : f32 to vector<8x16xf32>
    %329 = arith.mulf %139, %328 : vector<8x16xf32>
    %330 = vector.broadcast %51 : f32 to vector<8x16xf32>
    %331 = arith.mulf %141, %330 : vector<8x16xf32>
    %332 = arith.addf %329, %331 : vector<8x16xf32>
    %333 = vector.broadcast %83 : f32 to vector<8x16xf32>
    %334 = arith.mulf %143, %333 : vector<8x16xf32>
    %335 = arith.addf %332, %334 : vector<8x16xf32>
    %336 = vector.shape_cast %145 : vector<1x16xi1> to vector<1x16xi1>
    %337 = vector.broadcast %336 : vector<1x16xi1> to vector<8x16xi1>
    %338 = vector.broadcast %cst : f32 to vector<8x16xf32>
    %339 = arith.select %337, %335, %338 : vector<8x16xi1>, vector<8x16xf32>
    %340 = arith.maximumf %117, %339 : vector<8x16xf32>
    %341 = vector.broadcast %20 : f32 to vector<8x16xf32>
    %342 = arith.mulf %139, %341 : vector<8x16xf32>
    %343 = vector.broadcast %52 : f32 to vector<8x16xf32>
    %344 = arith.mulf %141, %343 : vector<8x16xf32>
    %345 = arith.addf %342, %344 : vector<8x16xf32>
    %346 = vector.broadcast %84 : f32 to vector<8x16xf32>
    %347 = arith.mulf %143, %346 : vector<8x16xf32>
    %348 = arith.addf %345, %347 : vector<8x16xf32>
    %349 = vector.shape_cast %145 : vector<1x16xi1> to vector<1x16xi1>
    %350 = vector.broadcast %349 : vector<1x16xi1> to vector<8x16xi1>
    %351 = vector.broadcast %cst : f32 to vector<8x16xf32>
    %352 = arith.select %350, %348, %351 : vector<8x16xi1>, vector<8x16xf32>
    %353 = arith.maximumf %118, %352 : vector<8x16xf32>
    %354 = vector.broadcast %21 : f32 to vector<8x16xf32>
    %355 = arith.mulf %139, %354 : vector<8x16xf32>
    %356 = vector.broadcast %53 : f32 to vector<8x16xf32>
    %357 = arith.mulf %141, %356 : vector<8x16xf32>
    %358 = arith.addf %355, %357 : vector<8x16xf32>
    %359 = vector.broadcast %85 : f32 to vector<8x16xf32>
    %360 = arith.mulf %143, %359 : vector<8x16xf32>
    %361 = arith.addf %358, %360 : vector<8x16xf32>
    %362 = vector.shape_cast %145 : vector<1x16xi1> to vector<1x16xi1>
    %363 = vector.broadcast %362 : vector<1x16xi1> to vector<8x16xi1>
    %364 = vector.broadcast %cst : f32 to vector<8x16xf32>
    %365 = arith.select %363, %361, %364 : vector<8x16xi1>, vector<8x16xf32>
    %366 = arith.maximumf %119, %365 : vector<8x16xf32>
    %367 = vector.broadcast %22 : f32 to vector<8x16xf32>
    %368 = arith.mulf %139, %367 : vector<8x16xf32>
    %369 = vector.broadcast %54 : f32 to vector<8x16xf32>
    %370 = arith.mulf %141, %369 : vector<8x16xf32>
    %371 = arith.addf %368, %370 : vector<8x16xf32>
    %372 = vector.broadcast %86 : f32 to vector<8x16xf32>
    %373 = arith.mulf %143, %372 : vector<8x16xf32>
    %374 = arith.addf %371, %373 : vector<8x16xf32>
    %375 = vector.shape_cast %145 : vector<1x16xi1> to vector<1x16xi1>
    %376 = vector.broadcast %375 : vector<1x16xi1> to vector<8x16xi1>
    %377 = vector.broadcast %cst : f32 to vector<8x16xf32>
    %378 = arith.select %376, %374, %377 : vector<8x16xi1>, vector<8x16xf32>
    %379 = arith.maximumf %120, %378 : vector<8x16xf32>
    %380 = vector.broadcast %23 : f32 to vector<8x16xf32>
    %381 = arith.mulf %139, %380 : vector<8x16xf32>
    %382 = vector.broadcast %55 : f32 to vector<8x16xf32>
    %383 = arith.mulf %141, %382 : vector<8x16xf32>
    %384 = arith.addf %381, %383 : vector<8x16xf32>
    %385 = vector.broadcast %87 : f32 to vector<8x16xf32>
    %386 = arith.mulf %143, %385 : vector<8x16xf32>
    %387 = arith.addf %384, %386 : vector<8x16xf32>
    %388 = vector.shape_cast %145 : vector<1x16xi1> to vector<1x16xi1>
    %389 = vector.broadcast %388 : vector<1x16xi1> to vector<8x16xi1>
    %390 = vector.broadcast %cst : f32 to vector<8x16xf32>
    %391 = arith.select %389, %387, %390 : vector<8x16xi1>, vector<8x16xf32>
    %392 = arith.maximumf %121, %391 : vector<8x16xf32>
    %393 = vector.broadcast %24 : f32 to vector<8x16xf32>
    %394 = arith.mulf %139, %393 : vector<8x16xf32>
    %395 = vector.broadcast %56 : f32 to vector<8x16xf32>
    %396 = arith.mulf %141, %395 : vector<8x16xf32>
    %397 = arith.addf %394, %396 : vector<8x16xf32>
    %398 = vector.broadcast %88 : f32 to vector<8x16xf32>
    %399 = arith.mulf %143, %398 : vector<8x16xf32>
    %400 = arith.addf %397, %399 : vector<8x16xf32>
    %401 = vector.shape_cast %145 : vector<1x16xi1> to vector<1x16xi1>
    %402 = vector.broadcast %401 : vector<1x16xi1> to vector<8x16xi1>
    %403 = vector.broadcast %cst : f32 to vector<8x16xf32>
    %404 = arith.select %402, %400, %403 : vector<8x16xi1>, vector<8x16xf32>
    %405 = arith.maximumf %122, %404 : vector<8x16xf32>
    %406 = vector.broadcast %25 : f32 to vector<8x16xf32>
    %407 = arith.mulf %139, %406 : vector<8x16xf32>
    %408 = vector.broadcast %57 : f32 to vector<8x16xf32>
    %409 = arith.mulf %141, %408 : vector<8x16xf32>
    %410 = arith.addf %407, %409 : vector<8x16xf32>
    %411 = vector.broadcast %89 : f32 to vector<8x16xf32>
    %412 = arith.mulf %143, %411 : vector<8x16xf32>
    %413 = arith.addf %410, %412 : vector<8x16xf32>
    %414 = vector.shape_cast %145 : vector<1x16xi1> to vector<1x16xi1>
    %415 = vector.broadcast %414 : vector<1x16xi1> to vector<8x16xi1>
    %416 = vector.broadcast %cst : f32 to vector<8x16xf32>
    %417 = arith.select %415, %413, %416 : vector<8x16xi1>, vector<8x16xf32>
    %418 = arith.maximumf %123, %417 : vector<8x16xf32>
    %419 = vector.broadcast %26 : f32 to vector<8x16xf32>
    %420 = arith.mulf %139, %419 : vector<8x16xf32>
    %421 = vector.broadcast %58 : f32 to vector<8x16xf32>
    %422 = arith.mulf %141, %421 : vector<8x16xf32>
    %423 = arith.addf %420, %422 : vector<8x16xf32>
    %424 = vector.broadcast %90 : f32 to vector<8x16xf32>
    %425 = arith.mulf %143, %424 : vector<8x16xf32>
    %426 = arith.addf %423, %425 : vector<8x16xf32>
    %427 = vector.shape_cast %145 : vector<1x16xi1> to vector<1x16xi1>
    %428 = vector.broadcast %427 : vector<1x16xi1> to vector<8x16xi1>
    %429 = vector.broadcast %cst : f32 to vector<8x16xf32>
    %430 = arith.select %428, %426, %429 : vector<8x16xi1>, vector<8x16xf32>
    %431 = arith.maximumf %124, %430 : vector<8x16xf32>
    %432 = vector.broadcast %27 : f32 to vector<8x16xf32>
    %433 = arith.mulf %139, %432 : vector<8x16xf32>
    %434 = vector.broadcast %59 : f32 to vector<8x16xf32>
    %435 = arith.mulf %141, %434 : vector<8x16xf32>
    %436 = arith.addf %433, %435 : vector<8x16xf32>
    %437 = vector.broadcast %91 : f32 to vector<8x16xf32>
    %438 = arith.mulf %143, %437 : vector<8x16xf32>
    %439 = arith.addf %436, %438 : vector<8x16xf32>
    %440 = vector.shape_cast %145 : vector<1x16xi1> to vector<1x16xi1>
    %441 = vector.broadcast %440 : vector<1x16xi1> to vector<8x16xi1>
    %442 = vector.broadcast %cst : f32 to vector<8x16xf32>
    %443 = arith.select %441, %439, %442 : vector<8x16xi1>, vector<8x16xf32>
    %444 = arith.maximumf %125, %443 : vector<8x16xf32>
    %445 = vector.broadcast %28 : f32 to vector<8x16xf32>
    %446 = arith.mulf %139, %445 : vector<8x16xf32>
    %447 = vector.broadcast %60 : f32 to vector<8x16xf32>
    %448 = arith.mulf %141, %447 : vector<8x16xf32>
    %449 = arith.addf %446, %448 : vector<8x16xf32>
    %450 = vector.broadcast %92 : f32 to vector<8x16xf32>
    %451 = arith.mulf %143, %450 : vector<8x16xf32>
    %452 = arith.addf %449, %451 : vector<8x16xf32>
    %453 = vector.shape_cast %145 : vector<1x16xi1> to vector<1x16xi1>
    %454 = vector.broadcast %453 : vector<1x16xi1> to vector<8x16xi1>
    %455 = vector.broadcast %cst : f32 to vector<8x16xf32>
    %456 = arith.select %454, %452, %455 : vector<8x16xi1>, vector<8x16xf32>
    %457 = arith.maximumf %126, %456 : vector<8x16xf32>
    %458 = vector.broadcast %29 : f32 to vector<8x16xf32>
    %459 = arith.mulf %139, %458 : vector<8x16xf32>
    %460 = vector.broadcast %61 : f32 to vector<8x16xf32>
    %461 = arith.mulf %141, %460 : vector<8x16xf32>
    %462 = arith.addf %459, %461 : vector<8x16xf32>
    %463 = vector.broadcast %93 : f32 to vector<8x16xf32>
    %464 = arith.mulf %143, %463 : vector<8x16xf32>
    %465 = arith.addf %462, %464 : vector<8x16xf32>
    %466 = vector.shape_cast %145 : vector<1x16xi1> to vector<1x16xi1>
    %467 = vector.broadcast %466 : vector<1x16xi1> to vector<8x16xi1>
    %468 = vector.broadcast %cst : f32 to vector<8x16xf32>
    %469 = arith.select %467, %465, %468 : vector<8x16xi1>, vector<8x16xf32>
    %470 = arith.maximumf %127, %469 : vector<8x16xf32>
    %471 = vector.broadcast %30 : f32 to vector<8x16xf32>
    %472 = arith.mulf %139, %471 : vector<8x16xf32>
    %473 = vector.broadcast %62 : f32 to vector<8x16xf32>
    %474 = arith.mulf %141, %473 : vector<8x16xf32>
    %475 = arith.addf %472, %474 : vector<8x16xf32>
    %476 = vector.broadcast %94 : f32 to vector<8x16xf32>
    %477 = arith.mulf %143, %476 : vector<8x16xf32>
    %478 = arith.addf %475, %477 : vector<8x16xf32>
    %479 = vector.shape_cast %145 : vector<1x16xi1> to vector<1x16xi1>
    %480 = vector.broadcast %479 : vector<1x16xi1> to vector<8x16xi1>
    %481 = vector.broadcast %cst : f32 to vector<8x16xf32>
    %482 = arith.select %480, %478, %481 : vector<8x16xi1>, vector<8x16xf32>
    %483 = arith.maximumf %128, %482 : vector<8x16xf32>
    %484 = vector.broadcast %31 : f32 to vector<8x16xf32>
    %485 = arith.mulf %139, %484 : vector<8x16xf32>
    %486 = vector.broadcast %63 : f32 to vector<8x16xf32>
    %487 = arith.mulf %141, %486 : vector<8x16xf32>
    %488 = arith.addf %485, %487 : vector<8x16xf32>
    %489 = vector.broadcast %95 : f32 to vector<8x16xf32>
    %490 = arith.mulf %143, %489 : vector<8x16xf32>
    %491 = arith.addf %488, %490 : vector<8x16xf32>
    %492 = vector.shape_cast %145 : vector<1x16xi1> to vector<1x16xi1>
    %493 = vector.broadcast %492 : vector<1x16xi1> to vector<8x16xi1>
    %494 = vector.broadcast %cst : f32 to vector<8x16xf32>
    %495 = arith.select %493, %491, %494 : vector<8x16xi1>, vector<8x16xf32>
    %496 = arith.maximumf %129, %495 : vector<8x16xf32>
    %497 = vector.broadcast %32 : f32 to vector<8x16xf32>
    %498 = arith.mulf %139, %497 : vector<8x16xf32>
    %499 = vector.broadcast %64 : f32 to vector<8x16xf32>
    %500 = arith.mulf %141, %499 : vector<8x16xf32>
    %501 = arith.addf %498, %500 : vector<8x16xf32>
    %502 = vector.broadcast %96 : f32 to vector<8x16xf32>
    %503 = arith.mulf %143, %502 : vector<8x16xf32>
    %504 = arith.addf %501, %503 : vector<8x16xf32>
    %505 = vector.shape_cast %145 : vector<1x16xi1> to vector<1x16xi1>
    %506 = vector.broadcast %505 : vector<1x16xi1> to vector<8x16xi1>
    %507 = vector.broadcast %cst : f32 to vector<8x16xf32>
    %508 = arith.select %506, %504, %507 : vector<8x16xi1>, vector<8x16xf32>
    %509 = arith.maximumf %130, %508 : vector<8x16xf32>
    %510 = vector.broadcast %33 : f32 to vector<8x16xf32>
    %511 = arith.mulf %139, %510 : vector<8x16xf32>
    %512 = vector.broadcast %65 : f32 to vector<8x16xf32>
    %513 = arith.mulf %141, %512 : vector<8x16xf32>
    %514 = arith.addf %511, %513 : vector<8x16xf32>
    %515 = vector.broadcast %97 : f32 to vector<8x16xf32>
    %516 = arith.mulf %143, %515 : vector<8x16xf32>
    %517 = arith.addf %514, %516 : vector<8x16xf32>
    %518 = vector.shape_cast %145 : vector<1x16xi1> to vector<1x16xi1>
    %519 = vector.broadcast %518 : vector<1x16xi1> to vector<8x16xi1>
    %520 = vector.broadcast %cst : f32 to vector<8x16xf32>
    %521 = arith.select %519, %517, %520 : vector<8x16xi1>, vector<8x16xf32>
    %522 = arith.maximumf %131, %521 : vector<8x16xf32>
    %523 = vector.broadcast %34 : f32 to vector<8x16xf32>
    %524 = arith.mulf %139, %523 : vector<8x16xf32>
    %525 = vector.broadcast %66 : f32 to vector<8x16xf32>
    %526 = arith.mulf %141, %525 : vector<8x16xf32>
    %527 = arith.addf %524, %526 : vector<8x16xf32>
    %528 = vector.broadcast %98 : f32 to vector<8x16xf32>
    %529 = arith.mulf %143, %528 : vector<8x16xf32>
    %530 = arith.addf %527, %529 : vector<8x16xf32>
    %531 = vector.shape_cast %145 : vector<1x16xi1> to vector<1x16xi1>
    %532 = vector.broadcast %531 : vector<1x16xi1> to vector<8x16xi1>
    %533 = vector.broadcast %cst : f32 to vector<8x16xf32>
    %534 = arith.select %532, %530, %533 : vector<8x16xi1>, vector<8x16xf32>
    %535 = arith.maximumf %132, %534 : vector<8x16xf32>
    %536 = vector.broadcast %35 : f32 to vector<8x16xf32>
    %537 = arith.mulf %139, %536 : vector<8x16xf32>
    %538 = vector.broadcast %67 : f32 to vector<8x16xf32>
    %539 = arith.mulf %141, %538 : vector<8x16xf32>
    %540 = arith.addf %537, %539 : vector<8x16xf32>
    %541 = vector.broadcast %99 : f32 to vector<8x16xf32>
    %542 = arith.mulf %143, %541 : vector<8x16xf32>
    %543 = arith.addf %540, %542 : vector<8x16xf32>
    %544 = vector.shape_cast %145 : vector<1x16xi1> to vector<1x16xi1>
    %545 = vector.broadcast %544 : vector<1x16xi1> to vector<8x16xi1>
    %546 = vector.broadcast %cst : f32 to vector<8x16xf32>
    %547 = arith.select %545, %543, %546 : vector<8x16xi1>, vector<8x16xf32>
    %548 = arith.maximumf %133, %547 : vector<8x16xf32>
    %549 = vector.broadcast %36 : f32 to vector<8x16xf32>
    %550 = arith.mulf %139, %549 : vector<8x16xf32>
    %551 = vector.broadcast %68 : f32 to vector<8x16xf32>
    %552 = arith.mulf %141, %551 : vector<8x16xf32>
    %553 = arith.addf %550, %552 : vector<8x16xf32>
    %554 = vector.broadcast %100 : f32 to vector<8x16xf32>
    %555 = arith.mulf %143, %554 : vector<8x16xf32>
    %556 = arith.addf %553, %555 : vector<8x16xf32>
    %557 = vector.shape_cast %145 : vector<1x16xi1> to vector<1x16xi1>
    %558 = vector.broadcast %557 : vector<1x16xi1> to vector<8x16xi1>
    %559 = vector.broadcast %cst : f32 to vector<8x16xf32>
    %560 = arith.select %558, %556, %559 : vector<8x16xi1>, vector<8x16xf32>
    %561 = arith.maximumf %134, %560 : vector<8x16xf32>
    %cst_170 = arith.constant dense<0xFF800000> : vector<8xf32>
    %562 = vector.multi_reduction <maximumf>, %158, %cst_170 [1] : vector<8x16xf32> to vector<8xf32>
    %563 = vector.shape_cast %562 : vector<8xf32> to vector<8x1xf32>
    %cst_171 = arith.constant dense<0xFF800000> : vector<8xf32>
    %564 = vector.multi_reduction <maximumf>, %171, %cst_171 [1] : vector<8x16xf32> to vector<8xf32>
    %565 = vector.shape_cast %564 : vector<8xf32> to vector<8x1xf32>
    %cst_172 = arith.constant dense<0xFF800000> : vector<8xf32>
    %566 = vector.multi_reduction <maximumf>, %184, %cst_172 [1] : vector<8x16xf32> to vector<8xf32>
    %567 = vector.shape_cast %566 : vector<8xf32> to vector<8x1xf32>
    %cst_173 = arith.constant dense<0xFF800000> : vector<8xf32>
    %568 = vector.multi_reduction <maximumf>, %197, %cst_173 [1] : vector<8x16xf32> to vector<8xf32>
    %569 = vector.shape_cast %568 : vector<8xf32> to vector<8x1xf32>
    %cst_174 = arith.constant dense<0xFF800000> : vector<8xf32>
    %570 = vector.multi_reduction <maximumf>, %210, %cst_174 [1] : vector<8x16xf32> to vector<8xf32>
    %571 = vector.shape_cast %570 : vector<8xf32> to vector<8x1xf32>
    %cst_175 = arith.constant dense<0xFF800000> : vector<8xf32>
    %572 = vector.multi_reduction <maximumf>, %223, %cst_175 [1] : vector<8x16xf32> to vector<8xf32>
    %573 = vector.shape_cast %572 : vector<8xf32> to vector<8x1xf32>
    %cst_176 = arith.constant dense<0xFF800000> : vector<8xf32>
    %574 = vector.multi_reduction <maximumf>, %236, %cst_176 [1] : vector<8x16xf32> to vector<8xf32>
    %575 = vector.shape_cast %574 : vector<8xf32> to vector<8x1xf32>
    %cst_177 = arith.constant dense<0xFF800000> : vector<8xf32>
    %576 = vector.multi_reduction <maximumf>, %249, %cst_177 [1] : vector<8x16xf32> to vector<8xf32>
    %577 = vector.shape_cast %576 : vector<8xf32> to vector<8x1xf32>
    %cst_178 = arith.constant dense<0xFF800000> : vector<8xf32>
    %578 = vector.multi_reduction <maximumf>, %262, %cst_178 [1] : vector<8x16xf32> to vector<8xf32>
    %579 = vector.shape_cast %578 : vector<8xf32> to vector<8x1xf32>
    %cst_179 = arith.constant dense<0xFF800000> : vector<8xf32>
    %580 = vector.multi_reduction <maximumf>, %275, %cst_179 [1] : vector<8x16xf32> to vector<8xf32>
    %581 = vector.shape_cast %580 : vector<8xf32> to vector<8x1xf32>
    %cst_180 = arith.constant dense<0xFF800000> : vector<8xf32>
    %582 = vector.multi_reduction <maximumf>, %288, %cst_180 [1] : vector<8x16xf32> to vector<8xf32>
    %583 = vector.shape_cast %582 : vector<8xf32> to vector<8x1xf32>
    %cst_181 = arith.constant dense<0xFF800000> : vector<8xf32>
    %584 = vector.multi_reduction <maximumf>, %301, %cst_181 [1] : vector<8x16xf32> to vector<8xf32>
    %585 = vector.shape_cast %584 : vector<8xf32> to vector<8x1xf32>
    %cst_182 = arith.constant dense<0xFF800000> : vector<8xf32>
    %586 = vector.multi_reduction <maximumf>, %314, %cst_182 [1] : vector<8x16xf32> to vector<8xf32>
    %587 = vector.shape_cast %586 : vector<8xf32> to vector<8x1xf32>
    %cst_183 = arith.constant dense<0xFF800000> : vector<8xf32>
    %588 = vector.multi_reduction <maximumf>, %327, %cst_183 [1] : vector<8x16xf32> to vector<8xf32>
    %589 = vector.shape_cast %588 : vector<8xf32> to vector<8x1xf32>
    %cst_184 = arith.constant dense<0xFF800000> : vector<8xf32>
    %590 = vector.multi_reduction <maximumf>, %340, %cst_184 [1] : vector<8x16xf32> to vector<8xf32>
    %591 = vector.shape_cast %590 : vector<8xf32> to vector<8x1xf32>
    %cst_185 = arith.constant dense<0xFF800000> : vector<8xf32>
    %592 = vector.multi_reduction <maximumf>, %353, %cst_185 [1] : vector<8x16xf32> to vector<8xf32>
    %593 = vector.shape_cast %592 : vector<8xf32> to vector<8x1xf32>
    %cst_186 = arith.constant dense<0xFF800000> : vector<8xf32>
    %594 = vector.multi_reduction <maximumf>, %366, %cst_186 [1] : vector<8x16xf32> to vector<8xf32>
    %595 = vector.shape_cast %594 : vector<8xf32> to vector<8x1xf32>
    %cst_187 = arith.constant dense<0xFF800000> : vector<8xf32>
    %596 = vector.multi_reduction <maximumf>, %379, %cst_187 [1] : vector<8x16xf32> to vector<8xf32>
    %597 = vector.shape_cast %596 : vector<8xf32> to vector<8x1xf32>
    %cst_188 = arith.constant dense<0xFF800000> : vector<8xf32>
    %598 = vector.multi_reduction <maximumf>, %392, %cst_188 [1] : vector<8x16xf32> to vector<8xf32>
    %599 = vector.shape_cast %598 : vector<8xf32> to vector<8x1xf32>
    %cst_189 = arith.constant dense<0xFF800000> : vector<8xf32>
    %600 = vector.multi_reduction <maximumf>, %405, %cst_189 [1] : vector<8x16xf32> to vector<8xf32>
    %601 = vector.shape_cast %600 : vector<8xf32> to vector<8x1xf32>
    %cst_190 = arith.constant dense<0xFF800000> : vector<8xf32>
    %602 = vector.multi_reduction <maximumf>, %418, %cst_190 [1] : vector<8x16xf32> to vector<8xf32>
    %603 = vector.shape_cast %602 : vector<8xf32> to vector<8x1xf32>
    %cst_191 = arith.constant dense<0xFF800000> : vector<8xf32>
    %604 = vector.multi_reduction <maximumf>, %431, %cst_191 [1] : vector<8x16xf32> to vector<8xf32>
    %605 = vector.shape_cast %604 : vector<8xf32> to vector<8x1xf32>
    %cst_192 = arith.constant dense<0xFF800000> : vector<8xf32>
    %606 = vector.multi_reduction <maximumf>, %444, %cst_192 [1] : vector<8x16xf32> to vector<8xf32>
    %607 = vector.shape_cast %606 : vector<8xf32> to vector<8x1xf32>
    %cst_193 = arith.constant dense<0xFF800000> : vector<8xf32>
    %608 = vector.multi_reduction <maximumf>, %457, %cst_193 [1] : vector<8x16xf32> to vector<8xf32>
    %609 = vector.shape_cast %608 : vector<8xf32> to vector<8x1xf32>
    %cst_194 = arith.constant dense<0xFF800000> : vector<8xf32>
    %610 = vector.multi_reduction <maximumf>, %470, %cst_194 [1] : vector<8x16xf32> to vector<8xf32>
    %611 = vector.shape_cast %610 : vector<8xf32> to vector<8x1xf32>
    %cst_195 = arith.constant dense<0xFF800000> : vector<8xf32>
    %612 = vector.multi_reduction <maximumf>, %483, %cst_195 [1] : vector<8x16xf32> to vector<8xf32>
    %613 = vector.shape_cast %612 : vector<8xf32> to vector<8x1xf32>
    %cst_196 = arith.constant dense<0xFF800000> : vector<8xf32>
    %614 = vector.multi_reduction <maximumf>, %496, %cst_196 [1] : vector<8x16xf32> to vector<8xf32>
    %615 = vector.shape_cast %614 : vector<8xf32> to vector<8x1xf32>
    %cst_197 = arith.constant dense<0xFF800000> : vector<8xf32>
    %616 = vector.multi_reduction <maximumf>, %509, %cst_197 [1] : vector<8x16xf32> to vector<8xf32>
    %617 = vector.shape_cast %616 : vector<8xf32> to vector<8x1xf32>
    %cst_198 = arith.constant dense<0xFF800000> : vector<8xf32>
    %618 = vector.multi_reduction <maximumf>, %522, %cst_198 [1] : vector<8x16xf32> to vector<8xf32>
    %619 = vector.shape_cast %618 : vector<8xf32> to vector<8x1xf32>
    %cst_199 = arith.constant dense<0xFF800000> : vector<8xf32>
    %620 = vector.multi_reduction <maximumf>, %535, %cst_199 [1] : vector<8x16xf32> to vector<8xf32>
    %621 = vector.shape_cast %620 : vector<8xf32> to vector<8x1xf32>
    %cst_200 = arith.constant dense<0xFF800000> : vector<8xf32>
    %622 = vector.multi_reduction <maximumf>, %548, %cst_200 [1] : vector<8x16xf32> to vector<8xf32>
    %623 = vector.shape_cast %622 : vector<8xf32> to vector<8x1xf32>
    %cst_201 = arith.constant dense<0xFF800000> : vector<8xf32>
    %624 = vector.multi_reduction <maximumf>, %561, %cst_201 [1] : vector<8x16xf32> to vector<8xf32>
    %625 = vector.shape_cast %624 : vector<8xf32> to vector<8x1xf32>
    %626 = tpu.concatenate %563, %565, %567, %569, %571, %573, %575, %577, %579, %581, %583, %585, %587, %589, %591, %593 in 1 : vector<8x1xf32>, vector<8x1xf32>, vector<8x1xf32>, vector<8x1xf32>, vector<8x1xf32>, vector<8x1xf32>, vector<8x1xf32>, vector<8x1xf32>, vector<8x1xf32>, vector<8x1xf32>, vector<8x1xf32>, vector<8x1xf32>, vector<8x1xf32>, vector<8x1xf32>, vector<8x1xf32>, vector<8x1xf32> -> vector<8x16xf32>
    %627 = tpu.concatenate %595, %597, %599, %601, %603, %605, %607, %609, %611, %613, %615, %617, %619, %621, %623, %625 in 1 : vector<8x1xf32>, vector<8x1xf32>, vector<8x1xf32>, vector<8x1xf32>, vector<8x1xf32>, vector<8x1xf32>, vector<8x1xf32>, vector<8x1xf32>, vector<8x1xf32>, vector<8x1xf32>, vector<8x1xf32>, vector<8x1xf32>, vector<8x1xf32>, vector<8x1xf32>, vector<8x1xf32>, vector<8x1xf32> -> vector<8x16xf32>
    %628 = tpu.concatenate %626, %627 in 1 : vector<8x16xf32>, vector<8x16xf32> -> vector<8x32xf32>
    %629 = arith.index_cast %102 : i32 to index
    %c0_202 = arith.constant 0 : index
    %630 = vector.load %arg13[%629, %c0_202] : memref<8x32xf32, #tpu.memory_space<vmem>>, vector<8x32xf32>
    tpu.vector_store %arg13[%629, %c0_202], %628 {strides = array<i32>} : memref<8x32xf32, #tpu.memory_space<vmem>>, vector<8x32xf32>,
    %c1_i32 = arith.constant 1 : i32
    %c0_203 = arith.constant 0 : index
    %c0_204 = arith.constant 0 : index
    %631 = vector.load %arg13[%c0_203, %c0_204] : memref<8x32xf32, #tpu.memory_space<vmem>>, vector<8x32xf32>
    %c0_205 = arith.constant 0 : index
    %c0_206 = arith.constant 0 : index
    %632 = vector.load %arg3[%c0_205, %c0_206] : memref<1x32xf32, #tpu.memory_space<vmem>>, vector<1x32xf32>
    %633 = vector.broadcast %632 : vector<1x32xf32> to vector<8x32xf32>
    %634 = arith.addf %631, %633 : vector<8x32xf32>
    %cst_207 = arith.constant 0.000000e+00 : f32
    %635 = vector.broadcast %cst_207 : f32 to vector<8x32xf32>
    %636 = arith.maximumf %634, %635 : vector<8x32xf32>
    %c0_208 = arith.constant 0 : index
    %c0_209 = arith.constant 0 : index
    %637 = vector.load %arg4[%c0_208, %c0_209] : memref<32x64xf32, #tpu.memory_space<vmem>>, vector<32x64xf32>
    %cst_210 = arith.constant dense<0.000000e+00> : vector<8x64xf32>
    %638 = tpu.matmul %636, %637, %cst_210 {dimension_numbers = #tpu.dot_dimension_numbers<[1], [0], [0], [1], [0, 0, 1, 1], [], []>, precision = #tpu.contract_precision<fp32>} : vector<8x32xf32>, vector<32x64xf32>, vector<8x64xf32> -> vector<8x64xf32>
    %c0_211 = arith.constant 0 : index
    %c0_212 = arith.constant 0 : index
    %639 = vector.load %arg5[%c0_211, %c0_212] : memref<1x64xf32, #tpu.memory_space<vmem>>, vector<1x64xf32>
    %640 = vector.broadcast %639 : vector<1x64xf32> to vector<8x64xf32>
    %641 = arith.addf %638, %640 : vector<8x64xf32>
    %cst_213 = arith.constant 0.000000e+00 : f32
    %642 = vector.broadcast %cst_213 : f32 to vector<8x64xf32>
    %643 = arith.maximumf %641, %642 : vector<8x64xf32>
    %c0_214 = arith.constant 0 : index
    %c0_215 = arith.constant 0 : index
    %644 = vector.load %arg6[%c0_214, %c0_215] : memref<64x64xf32, #tpu.memory_space<vmem>>, vector<64x64xf32>
    %cst_216 = arith.constant dense<0.000000e+00> : vector<8x64xf32>
    %645 = tpu.matmul %643, %644, %cst_216 {dimension_numbers = #tpu.dot_dimension_numbers<[1], [0], [0], [1], [0, 0, 1, 1], [], []>, precision = #tpu.contract_precision<fp32>} : vector<8x64xf32>, vector<64x64xf32>, vector<8x64xf32> -> vector<8x64xf32>
    %c0_217 = arith.constant 0 : index
    %c0_218 = arith.constant 0 : index
    %646 = vector.load %arg7[%c0_217, %c0_218] : memref<1x64xf32, #tpu.memory_space<vmem>>, vector<1x64xf32>
    %647 = vector.broadcast %646 : vector<1x64xf32> to vector<8x64xf32>
    %648 = arith.addf %645, %647 : vector<8x64xf32>
    %cst_219 = arith.constant 0.000000e+00 : f32
    %649 = vector.broadcast %cst_219 : f32 to vector<8x64xf32>
    %650 = arith.maximumf %648, %649 : vector<8x64xf32>
    %c0_220 = arith.constant 0 : index
    %c0_221 = arith.constant 0 : index
    %651 = vector.load %arg8[%c0_220, %c0_221] : memref<1x64xf32, #tpu.memory_space<vmem>>, vector<1x64xf32>
    %652 = vector.broadcast %651 : vector<1x64xf32> to vector<8x64xf32>
    %653 = arith.mulf %650, %652 : vector<8x64xf32>
    %cst_222 = arith.constant dense<0.000000e+00> : vector<8xf32>
    %654 = vector.multi_reduction <add>, %653, %cst_222 [1] : vector<8x64xf32> to vector<8xf32>
    %655 = vector.shape_cast %654 : vector<8xf32> to vector<8x1xf32>
    %c0_223 = arith.constant 0 : index
    %c0_224 = arith.constant 0 : index
    %656 = vector.load %arg9[%c0_223, %c0_224] : memref<1x1xf32, #tpu.memory_space<vmem>>, vector<1x1xf32>
    %657 = vector.broadcast %656 : vector<1x1xf32> to vector<8x1xf32>
    %658 = arith.addf %655, %657 : vector<8x1xf32>
    %c0_225 = arith.constant 0 : index
    %c0_226 = arith.constant 0 : index
    %659 = vector.load %arg10[%c0_225, %c0_226] : memref<8x1xf32, #tpu.memory_space<vmem>>, vector<8x1xf32>
    tpu.vector_store %arg10[%c0_225, %c0_226], %658 {strides = array<i32>} : memref<8x1xf32, #tpu.memory_space<vmem>>, vector<8x1xf32>,
    return
  }
  func.func @transform_0(%arg0: i32) -> (i32, i32) {
    %c0_i32 = arith.constant 0 : i32
    %c0_i32_0 = arith.constant 0 : i32
    %c0_i32_1 = arith.constant 0 : i32
    return %c0_i32, %c0_i32_0 : i32, i32
  }
  func.func @transform_1(%arg0: i32) -> (i32, i32) {
    %c0_i32 = arith.constant 0 : i32
    %c0_i32_0 = arith.constant 0 : i32
    return %arg0, %c0_i32 : i32, i32
  }
  func.func @transform_2(%arg0: i32) -> (i32, i32) {
    %c0_i32 = arith.constant 0 : i32
    %c0_i32_0 = arith.constant 0 : i32
    %c0_i32_1 = arith.constant 0 : i32
    return %c0_i32, %c0_i32_0 : i32, i32
  }
  func.func @transform_3(%arg0: i32) -> (i32, i32) {
    %c0_i32 = arith.constant 0 : i32
    %c0_i32_0 = arith.constant 0 : i32
    %c0_i32_1 = arith.constant 0 : i32
    return %c0_i32, %c0_i32_0 : i32, i32
  }
  func.func @transform_4(%arg0: i32) -> (i32, i32) {
    %c0_i32 = arith.constant 0 : i32
    %c0_i32_0 = arith.constant 0 : i32
    %c0_i32_1 = arith.constant 0 : i32
    return %c0_i32, %c0_i32_0 : i32, i32
  }
  func.func @transform_5(%arg0: i32) -> (i32, i32) {
    %c0_i32 = arith.constant 0 : i32
    %c0_i32_0 = arith.constant 0 : i32
    %c0_i32_1 = arith.constant 0 : i32
    return %c0_i32, %c0_i32_0 : i32, i32
  }
  func.func @transform_6(%arg0: i32) -> (i32, i32) {
    %c0_i32 = arith.constant 0 : i32
    %c0_i32_0 = arith.constant 0 : i32
    %c0_i32_1 = arith.constant 0 : i32
    return %c0_i32, %c0_i32_0 : i32, i32
  }
  func.func @transform_7(%arg0: i32) -> (i32, i32) {
    %c0_i32 = arith.constant 0 : i32
    %c0_i32_0 = arith.constant 0 : i32
    %c0_i32_1 = arith.constant 0 : i32
    return %c0_i32, %c0_i32_0 : i32, i32
  }
  func.func @transform_8(%arg0: i32) -> (i32, i32) {
    %c0_i32 = arith.constant 0 : i32
    %c0_i32_0 = arith.constant 0 : i32
    %c0_i32_1 = arith.constant 0 : i32
    return %c0_i32, %c0_i32_0 : i32, i32
  }
  func.func @transform_9(%arg0: i32) -> (i32, i32) {
    %c0_i32 = arith.constant 0 : i32
    %c0_i32_0 = arith.constant 0 : i32
    return %arg0, %c0_i32 : i32, i32
  }
}

</mosaic_0001>

<bundles_post_ra>
// kernel: tpu_custom_call.1
= control target key start
LH: loop header
LB: loop body
LE: loop exit
PB: predicated region body
PF: predicated region fallthrough
CT: control target
= control target key end

     0   :  { %s3269_s0 = inlined_call_operand.hbm [shape: f32[3,32], index: 0, kind: input, shape index: {}]   ;;  %s3270_s1 = inlined_call_operand.hbm [shape: f32[8,16], index: 1, kind: input, shape index: {}]   ;;  %s3271_s2 = inlined_call_operand.vmem [shape: f32[1,32], index: 2, kind: input, shape index: {}]   ;;  %s3272_s3 = inlined_call_operand.hbm [shape: f32[32,64], index: 3, kind: input, shape index: {}]   ;;  %s3273_s4 = inlined_call_operand.vmem [shape: f32[1,64], index: 4, kind: input, shape index: {}]   ;;  %s3274_s5 = inlined_call_operand.hbm [shape: f32[64,64], index: 5, kind: input, shape index: {}]   ;;  %s3275_s6 = inlined_call_operand.vmem [shape: f32[1,64], index: 6, kind: input, shape index: {}]   ;;  %s3276_s7 = inlined_call_operand.vmem [shape: f32[1,64], index: 7, kind: input, shape index: {}]   ;;  %s3277_s8 = inlined_call_operand.<no memory space> [shape: f32[1,1], index: 8, kind: input, shape index: {}]   ;;  %s3278_s9 = inlined_call_operand.vmem [shape: f32[8,1], index: 9, kind: output, shape index: {}]  }
   0x1   :  { %3318 = sst [smem:[#allocation52_spill]] %s3271_s2  ;;  %v14_v0 = vstv %s3277_s8 }
   0x2   :  { %3319 = sst [smem:[#allocation53_spill]] %s3273_s4  ;;  %15 = vst [vmem:[#allocation5] sm:$0x1] %v14_v0 }
   0x3   :  { %3320 = sst [smem:[#allocation54_spill]] %s3275_s6 }
   0x4   :  { %3321 = sst [smem:[#allocation55_spill]] %s3276_s7 }
   0x5   :  { %3322 = sst [smem:[#allocation56_spill]] %s3278_s9 }
   0x6   :  { %16 = vsyncpa [#allocation8], 0 }
   0x7   :  { %17 = vsyncpa [#allocation7], 0 }
   0x8   :  { %18 = vsyncpa [#allocation11], 0  ;;  %s2178_s11 = smov [#allocation10]  }
   0x9   :  { %s44_s12 = sshll.u32 %s2178_s11, 4  ;;  %s45_s12 = int_to_ptr.vmem [resolvable:$true] %s44_s12 }
   0xa   :  { %s2112_s13 = scalar_lea.vmem %s45_s12, 512  ;;  %p2117_p1 = scmp.lt.s32.totalorder %s45_s12, %s45_s12 }
   0xb   :  { %p2113_p0 = scmp.ne.s32.totalorder %s45_s12, %s2112_s13  ;;  %p2118_p2 = scmp.lt.s32.totalorder %s2112_s13, %s2112_s13 }
   0xd   :  { %p2119_p3 = por %p2118_p2, %p2117_p1 }
   0xf   :  { %p2120_p4 = pnand %p2119_p3, %p2113_p0 }
  0x11   :  { %2123 = shalt.err (!%p2120_p4)
}
  0x12   :  { %s2179_s14 = smov 128   ;;  %s2180_s15 = smov 8  }
  0x13   :  { %50 = dma.hbm_to_vmem [thread:$0]  %s3272_s3, 512, %s45_s12, [#allocation11], %s2179_s14, %s2179_s14, %s2180_s15  }
  0x14   :  { %s2181_s8 = smov [#allocation6]   ;;  %s2182_s20 = smov [#allocation9]  }
  0x15   :  { %26 = dma.hbm_to_smem %s3269_s0, 64, %s2181_s8, [#allocation8]  }
  0x16   :  { %s33_s21 = sshll.u32 %s2182_s20, 4  ;;  %s2183_s22 = smov [#allocation12]   ;;  %s34_s21 = int_to_ptr.vmem [resolvable:$true] %s33_s21 }
  0x17   :  { %s58_s23 = sshll.u32 %s2183_s22, 4  ;;  %s2140_s24 = scalar_lea.vmem %s34_s21, 128  ;;  %s59_s23 = int_to_ptr.vmem [resolvable:$true] %s58_s23 }
  0x18   :  { %p2141_p5 = scmp.ne.s32.totalorder %s34_s21, %s2140_s24  ;;  %p2145_p6 = scmp.lt.s32.totalorder %s34_s21, %s34_s21 }
  0x19   :  { %p2146_p7 = scmp.lt.s32.totalorder %s2140_s24, %s2140_s24 }
  0x1b   :  { %p2147_p8 = por %p2146_p7, %p2145_p6 }
  0x1d   :  { %p2148_p9 = pnand %p2147_p8, %p2141_p5 }
  0x1f   :  { %2151 = shalt.err (!%p2148_p9)
}
  0x20   :  { %36 = dma.hbm_to_vmem [thread:$0]  %s3270_s1, 128, %s34_s21, [#allocation7]  }
  0x21   :  { %s2160_s26 = scalar_lea.vmem %s59_s23, 1024  ;;  %p2165_p11 = scmp.lt.s32.totalorder %s59_s23, %s59_s23 }
  0x22   :  { %p2161_p10 = scmp.ne.s32.totalorder %s59_s23, %s2160_s26  ;;  %p2166_p12 = scmp.lt.s32.totalorder %s2160_s26, %s2160_s26 }
  0x24   :  { %p2167_p13 = por %p2166_p12, %p2165_p11 }
  0x26   :  { %p2168_p0 = pnand %p2167_p13, %p2161_p10 }
  0x28   :  { %2171 = shalt.err (!%p2168_p0)
}
  0x29   :  { %64 = dma.hbm_to_vmem [thread:$0]  %s3274_s5, 1024, %s59_s23, [#allocation11], %s2179_s14, %s2179_s14, %s2180_s15  }
  0x2a   :  { %2172 = dma.done.wait [#allocation8], 64  }
  0x2b   :  { %2173 = vsyncadd [#allocation8], 4294967232 }
  0x2c   :  { %2174 = dma.done.wait [#allocation7], 128  }
  0x2d   :  { %2175 = vsyncadd [#allocation7], 4294967168 }
  0x2e   :  { %2176 = dma.done.wait [#allocation11], 1536  }
  0x2f   :  { %2177 = vsyncadd [#allocation11], 4294965760 }
  0x30   :  { %83 = sfence }
  0x31   :  { %v2254_v1 = vld [vmem:[#allocation9] sm:$0xff]  ;;  %s2184_s1 = smov 127   ;;  %s2185_s28 = smov 126   ;;  %v192_v2 = vlaneseq  ;;  %vm89_vm0 = vcmask 121856   ;;  %vm94_vm1 = vcmask 113664   ;;  %vm3317_vm3 = vcmask 130048  }
  0x32   :  { %86 = vrot.lane.b32.xlu0 %v2254_v1, %s2184_s1  ;;  %s2258_s29 = sld [smem:[#allocation6 + $0x12]]  ;;  %vm585_vm4 = vcmask 7168   ;;  %vm587_vm5 = vcmask 15360   ;;  %vm589_vm6 = vcmask 23552   ;;  %vm591_vm7 = vcmask 31744  }
  0x33   :  { %s2260_s30 = sld [smem:[#allocation6 + $0x92]]  ;;  %v2366_v5 = vand.u32 127, %v192_v2  ;;  %vm593_vm8 = vcmask 39936   ;;  %vm595_vm9 = vcmask 48128   ;;  %vm597_vm10 = vcmask 56320  }
  0x34   :  { %s2262_s5 = sld [smem:[#allocation6 + $0x112]]  ;;  %vm599_vm11 = vcmask 64512   ;;  %vm601_vm12 = vcmask 72704   ;;  %vm603_vm13 = vcmask 80896   ;;  %vm605_vm14 = vcmask 89088  }
  0x35   :  { %s2264_s10 = sld [smem:[#allocation6 + $0x10]]  ;;  %vm197_vm2 = vcmp.lt.s32.totalorder %v2366_v5, 14  ;;  %vm607_vm15 = vcmask 97280  }
  0x36   :  { %91 = vrot.lane.b32.xlu0 %v2254_v1, %s2185_s28  ;;  %s2266_s11 = sld [smem:[#allocation6 + $0x90]] }
  0x37   :  { %s2268_s12 = sld [smem:[#allocation6 + $0x110]] }
  0x38   :  { %s2270_s13 = sld [smem:[#allocation6 + $0x1b]]  ;;  %v362_v3 = vstv %s2258_s29 }
  0x39   :  { %3323 = sst [smem:[#allocation16_spill]] %s2260_s30  ;;  %v2372_v7 = vmul.f32 %v362_v3, %v2254_v1  ;;  %v364_v8 = vstv %s2260_s30 }
  0x3a   :  { %3324 = sst [smem:[#allocation17_spill]] %s2262_s5  ;;  %v367_v9 = vstv %s2262_s5 }
  0x3b   :  { %s2272_s14 = sld [smem:[#allocation6 + $0x9b]]  ;;  %v344_v4 = vstv %s2264_s10 }
  0x3c   :  { %3325 = sst [smem:[#allocation18_spill]] %s2266_s11  ;;  %v2380_v11 = vmul.f32 %v344_v4, %v2254_v1  ;;  %v346_v12 = vstv %s2266_s11 }
  0x3d   :  { %3326 = sst [smem:[#allocation19_spill]] %s2268_s12  ;;  %v349_v13 = vstv %s2268_s12 }
  0x3e   :  { %s2274_s15 = sld [smem:[#allocation6 + $0x11b]]  ;;  %v443_v6 = vstv %s2270_s13 }
  0x3f   :  { %s2276_s16 = sld [smem:[#allocation6 + $0x11]]  ;;  %v2388_v15 = vmul.f32 %v443_v6, %v2254_v1 }
  0x40   :  { %s2278_s17 = sld [smem:[#allocation6 + $0x91]] }
  0x41   :  { %3327 = sst [smem:[#allocation20_spill]] %s2272_s14  ;;  %v445_v16 = vstv %s2272_s14 }
  0x42   :  { %s2280_s8 = sld [smem:[#allocation6 + $0x111]] }
  0x43   :  { %s2282_s18 = sld [smem:[#allocation6 + $0x1d]] }
  0x44   :  { %3328 = sst [smem:[#allocation21_spill]] %s2274_s15  ;;  %v448_v17 = vstv %s2274_s15 }
  0x45   :  { %s2284_s19 = sld [smem:[#allocation6 + $0x9d]]  ;;  %v353_v10 = vstv %s2276_s16 }
  0x46   :  { %3329 = sst [smem:[#allocation22_spill]] %s2278_s17  ;;  %v2396_v19 = vmul.f32 %v353_v10, %v2254_v1  ;;  %v355_v20 = vstv %s2278_s17 }
  0x47   :  { %s2286_s20 = sld [smem:[#allocation6 + $0x11d]] }
  0x48   :  { %3330 = sst [smem:[#allocation23_spill]] %s2280_s8  ;;  %v358_v21 = vstv %s2280_s8 }
  0x49   :  { %s2288_s21 = sld [smem:[#allocation6 + $0x13]]  ;;  %v461_v14 = vstv %s2282_s18 }
  0x4a   :  { %s2290_s22 = sld [smem:[#allocation6 + $0x93]]  ;;  %v2404_v23 = vmul.f32 %v461_v14, %v2254_v1 }
  0x4b   :  { %3331 = sst [smem:[#allocation24_spill]] %s2284_s19  ;;  %v463_v24 = vstv %s2284_s19 }
  0x4c   :  { %s2292_s23 = sld [smem:[#allocation6 + $0x113]] }
  0x4d   :  { %3332 = sst [smem:[#allocation25_spill]] %s2286_s20  ;;  %v466_v25 = vstv %s2286_s20 }
  0x4e   :  { %s2294_s24 = sld [smem:[#allocation6 + $0x1f]] }
  0x4f   :  { %s2296_s25 = sld [smem:[#allocation6 + $0x9f]]  ;;  %v371_v18 = vstv %s2288_s21 }
  0x50   :  { %3333 = sst [smem:[#allocation26_spill]] %s2290_s22  ;;  %v2412_v27 = vmul.f32 %v371_v18, %v2254_v1  ;;  %v373_v28 = vstv %s2290_s22 }
  0x51   :  { %s2298_s3 = sld [smem:[#allocation6 + $0x11f]] }
  0x52   :  { %3334 = sst [smem:[#allocation27_spill]] %s2292_s23  ;;  %v376_v29 = vstv %s2292_s23 }
  0x53   :  { %s2300_s26 = sld [smem:[#allocation6 + $0x14]] }
  0x54   :  { %s2302_s0 = sld [smem:[#allocation6 + $0x94]]  ;;  %v479_v22 = vstv %s2294_s24 }
  0x55   :  { %3335 = sst [smem:[#allocation28_spill]] %s2296_s25  ;;  %v2420_v31 = vmul.f32 %v479_v22, %v2254_v1 }
  0x56   :  { %s2304_s27 = sld [smem:[#allocation6 + $0x114]] }
  0x57   :  { %3336 = sst [smem:[#allocation29_spill]] %s2298_s3 }
  0x58   :  { %s2306_s1 = sld [smem:[#allocation6 + $0x15]] }
  0x59   :  { %s2308_s28 = sld [smem:[#allocation6 + $0x95]]  ;;  %v380_v26 = vstv %s2300_s26 }
  0x5a   :  { %3337 = sst [smem:[#allocation30_spill]] %s2302_s0  ;;  %v2428_v35 = vmul.f32 %v380_v26, %v2254_v1 }
  0x5b   :  { %s2310_s9 = sld [smem:[#allocation6 + $0x115]] }
  0x5c   :  { %3338 = sst [smem:[#allocation31_spill]] %s2304_s27 }
  0x5d   :  { %s2312_s7 = sld [smem:[#allocation6 + $0x1]] }
  0x5e   :  { %3339 = sst [smem:[#allocation32_spill]] %s2306_s1 }
  0x5f   :  { %3340 = sst [smem:[#allocation33_spill]] %s2308_s28 }
  0x60   :  { %s2314_s6 = sld [smem:[#allocation6 + $0x81]] }
  0x61   :  { %3341 = sst [smem:[#allocation34_spill]] %s2310_s9 }
  0x62   :  { %s2316_s4 = sld [smem:[#allocation6 + $0x101]] }
  0x63   :  { %s2318_s2 = sld [smem:[#allocation6 + $0x16]]  ;;  %v209_v34 = vstv %s2312_s7 }
  0x64   :  { %s2320_s3 = sld [smem:[#allocation6 + $0x96]]  ;;  %v2444_v43 = vmul.f32 %v209_v34, %v2254_v1 }
  0x65   :  { %s2322_s25 = sld [smem:[#allocation6 + $0x116]] }
  0x66   :  { %3342 = sst [smem:[#allocation35_spill]] %s2314_s6 }
  0x67   :  { %s2324_s0 = sld [smem:[#allocation6 + $0x3]] }
  0x68   :  { %3343 = sst [smem:[#allocation36_spill]] %s2316_s4 }
  0x69   :  { %3344 = sst [smem:[#allocation37_spill]] %s2318_s2 }
  0x6a   :  { %3345 = sst [smem:[#allocation38_spill]] %s2320_s3 }
  0x6b   :  { %3346 = sst [smem:[#allocation39_spill]] %s2322_s25 }
  0x6c   :  { %s2326_s27 = sld [smem:[#allocation6 + $0x83]] }
  0x6d   :  { %s2328_s1 = sld [smem:[#allocation6 + $0x103]]  ;;  %v227_v42 = vstv %s2324_s0 }
  0x6e   :  { %s2330_s28 = sld [smem:[#allocation6 + $0x17]]  ;;  %v2460_v51 = vmul.f32 %v227_v42, %v2254_v1 }
  0x6f   :  { %s2332_s9 = sld [smem:[#allocation6 + $0x97]] }
  0x70   :  { %s2334_s6 = sld [smem:[#allocation6 + $0x117]] }
  0x71   :  { %s2336_s4 = sld [smem:[#allocation6 + $0x5]] }
  0x72   :  { %3347 = sst [smem:[#allocation40_spill]] %s2326_s27 }
  0x73   :  { %3348 = sst [smem:[#allocation41_spill]] %s2328_s1 }
  0x74   :  { %3349 = sst [smem:[#allocation42_spill]] %s2330_s28 }
  0x75   :  { %3350 = sst [smem:[#allocation43_spill]] %s2332_s9 }
  0x76   :  { %3351 = sst [smem:[#allocation44_spill]] %s2334_s6 }
  0x77   :  { %3352 = sst [smem:[#allocation45_spill]] %s2336_s4 }
  0x78   :  { %s2338_s2 = sld [smem:[#allocation6 + $0x85]] }
  0x79   :  { %s2340_s3 = sld [smem:[#allocation6 + $0x105]] }
  0x7a   :  { %s2342_s25 = sld [smem:[#allocation6 + $0x18]] }
  0x7b   :  { %s2344_s27 = sld [smem:[#allocation6 + $0x98]] }
  0x7c   :  { %s2346_s1 = sld [smem:[#allocation6 + $0x118]] }
  0x7d   :  { %s2348_s28 = sld [smem:[#allocation6 + $0x7]] }
  0x7e   :  { %3353 = sst [smem:[#allocation46_spill]] %s2338_s2 }
  0x7f   :  { %3354 = sst [smem:[#allocation47_spill]] %s2340_s3 }
  0x80   :  { %s2350_s9 = sld [smem:[#allocation6 + $0x87]]  ;;  %v416_v54 = vstv %s2342_s25 }
  0x81   :  { %3355 = sst [smem:[#allocation48_spill]] %s2344_s27  ;;  %v2485_v0 = vmul.f32 %v416_v54, %v2254_v1 }
  0x82   :  { %3356 = sst [smem:[#allocation49_spill]] %s2346_s1 }
  0x83   :  { %s2352_s6 = sld [smem:[#allocation6 + $0x107]]  ;;  %v263_v59 = vstv %s2348_s28 }
  0x84   :  { %s2354_s4 = sld [smem:[#allocation6 + $0x19]]  ;;  %v2493_v6 = vmul.f32 %v263_v59, %v2254_v1 }
  0x85   :  { %s2356_s3 = sld [smem:[#allocation6 + $0x99]] }
  0x86   :  { %s2358_s2 = sld [smem:[#allocation6 + $0x119]] }
  0x87   :  { %s2361_s1 = sld [smem:[#allocation6 + $0x9]] }
  0x88   :  { %s2364_s27 = sld [smem:[#allocation6 + $0x89]] }
  0x89   :  { %3357 = sst [smem:[#allocation50_spill]] %s2352_s6 }
  0x8a   :  { %s2369_s6 = sld [smem:[#allocation6 + $0x109]]  ;;  %v425_v63 = vstv %s2354_s4 }
  0x8b   :  { %s2377_s29 = sld [smem:[#allocation6 + $0x1a]]  ;;  %v2501_v26 = vmul.f32 %v425_v63, %v2254_v1 }
  0x8c   :  { %3358 = sst [smem:[#allocation51_spill]] %s2358_s2 }
  0x8d   :  { %s2385_s10 = sld [smem:[#allocation6 + $0x9a]]  ;;  %v281_v4 = vstv %s2361_s1 }
  0x8e   :  { %s3359_s13 = sld [smem:[#allocation32_spill]]  ;;  %v2508_v42 = vmul.f32 %v281_v4, %v2254_v1 }
  0x8f   :  { %s2393_s16 = sld [smem:[#allocation6 + $0x11a]] }
  0x90   :  { %s3361_s18 = sld [smem:[#allocation28_spill]] }
  0x91   :  { %s3362_s12 = sld [smem:[#allocation29_spill]]  ;;  %v434_v18 = vstv %s2377_s29 }
  0x92   :  { %s2401_s5 = sld [smem:[#allocation6 + $0xb]]  ;;  %v2516_v59 = vmul.f32 %v434_v18, %v2254_v1 }
  0x93   :  { %s3363_s15 = sld [smem:[#allocation30_spill]] }
  0x94   :  { %s3364_s21 = sld [smem:[#allocation31_spill]]  ;;  %v389_v30 = vstv %s3359_s13 }
  0x95   :  { %3360 = sst [smem:[#allocation32_spill]] %s2393_s16  ;;  %v2436_v39 = vmul.f32 %v389_v30, %v2254_v1 }
  0x96   :  { %s3365_s14 = sld [smem:[#allocation37_spill]]  ;;  %v481_v32 = vstv %s3361_s18 }
  0x97   :  { %s2409_s11 = sld [smem:[#allocation6 + $0x8b]]  ;;  %v484_v33 = vstv %s3362_s12 }
  0x98   :  { %s3366_s8 = sld [smem:[#allocation33_spill]] }
  0x99   :  { %s3367_s24 = sld [smem:[#allocation34_spill]]  ;;  %v382_v36 = vstv %s3363_s15 }
  0x9a   :  { %s2417_s17 = sld [smem:[#allocation6 + $0x10b]]  ;;  %v385_v37 = vstv %s3364_s21 }
  0x9b   :  { %s3369_s20 = sld [smem:[#allocation35_spill]] }
  0x9c   :  { %s3370_s26 = sld [smem:[#allocation36_spill]]  ;;  %v398_v38 = vstv %s3365_s14 }
  0x9d   :  { %s3371_s19 = sld [smem:[#allocation42_spill]]  ;;  %v2452_v47 = vmul.f32 %v398_v38, %v2254_v1  ;;  %v299_v38 = vstv %s2401_s5 }
  0x9e   :  { %s2425_s30 = sld [smem:[#allocation6 + $0x1c]]  ;;  %v391_v40 = vstv %s3366_s8  ;;  %v2521_v4 = vmul.f32 %v299_v38, %v2254_v1 }
  0x9f   :  { %s3372_s23 = sld [smem:[#allocation38_spill]]  ;;  %v394_v41 = vstv %s3367_s24 }
  0xa0   :  { %3368 = sst [smem:[#allocation37_spill]] %s2417_s17 }
  0xa1   :  { %s3373_s13 = sld [smem:[#allocation39_spill]]  ;;  %v211_v44 = vstv %s3369_s20 }
  0xa2   :  { %s3374_s22 = sld [smem:[#allocation45_spill]]  ;;  %v214_v45 = vstv %s3370_s26 }
  0xa3   :  { %s2433_s17 = sld [smem:[#allocation6 + $0x9c]]  ;;  %v407_v46 = vstv %s3371_s19 }
  0xa4   :  { %s3376_s18 = sld [smem:[#allocation40_spill]]  ;;  %v87_v55 = vpop.permute.xlu0 %86  ;;  %v2468_v56 = vmul.f32 %v407_v46, %v2254_v1 }
  0xa5   :  { %s3377_s12 = sld [smem:[#allocation41_spill]]  ;;  %v400_v48 = vstv %s3372_s23  ;;  %90 = vst.msk [vmem:[#allocation2] sm:$0xff] %vm89_vm0, %v87_v55 }
  0xa6   :  { %s2441_s7 = sld [smem:[#allocation6 + $0x11c]] }
  0xa7   :  { %s3379_s21 = sld [smem:[#allocation43_spill]]  ;;  %v403_v49 = vstv %s3373_s13 }
  0xa8   :  { %s3380_s14 = sld [smem:[#allocation44_spill]]  ;;  %v245_v50 = vstv %s3374_s22  ;;  %v92_v22 = vpop.permute.xlu0 %91 }
  0xa9   :  { %3375 = sst [smem:[#allocation42_spill]] %s2433_s17  ;;  %v2477_v60 = vmul.f32 %v245_v50, %v2254_v1  ;;  %95 = vst.msk [vmem:[#allocation3] sm:$0xff] %vm94_vm1, %v92_v22  ;;  %v452_v50 = vstv %s2425_s30 }
  0xaa   :  { %s2449_s15 = sld [smem:[#allocation6 + $0xd]]  ;;  %v229_v52 = vstv %s3376_s18  ;;  %v2529_v18 = vmul.f32 %v452_v50, %v2254_v1 }
  0xab   :  { %s3381_s24 = sld [smem:[#allocation46_spill]]  ;;  %v232_v53 = vstv %s3377_s12 }
  0xac   :  { %3378 = sst [smem:[#allocation38_spill]] %s2441_s7  ;;  %v2526_v55 = vld [vmem:[#allocation2] sm:$0xff] }
  0xad   :  { %s3382_s0 = sld [smem:[#allocation47_spill]]  ;;  %v409_v57 = vstv %s3379_s21  ;;  %v365_v38 = vmul.f32 %v364_v8, %v2526_v55  ;;  %v347_v46 = vmul.f32 %v346_v12, %v2526_v55  ;;  %v446_v34 = vmul.f32 %v445_v16, %v2526_v55 }
  0xae   :  { %s2457_s8 = sld [smem:[#allocation6 + $0x8d]]  ;;  %v412_v58 = vstv %s3380_s14  ;;  %v356_v50 = vmul.f32 %v355_v20, %v2526_v55  ;;  %v464_v8 = vmul.f32 %v463_v24, %v2526_v55  ;;  %v374_v12 = vmul.f32 %v373_v28, %v2526_v55 }
  0xaf   :  { %s3384_s19 = sld [smem:[#allocation48_spill]]  ;;  %v348_v10 = vadd.f32 %v347_v46, %v2380_v11  ;;  %v447_v63 = vadd.f32 %v446_v34, %v2388_v15 }
  0xb0   :  { %s3385_s26 = sld [smem:[#allocation49_spill]]  ;;  %v317_v54 = vstv %s2449_s15  ;;  %v2566_v22 = vld [vmem:[#allocation3] sm:$0xff]  ;;  %v357_v24 = vadd.f32 %v356_v50, %v2396_v19 }
  0xb1   :  { %s2465_s20 = sld [smem:[#allocation6 + $0x1e]]  ;;  %v247_v61 = vstv %s3381_s24  ;;  %v2534_v30 = vmul.f32 %v317_v54, %v2254_v1  ;;  %v368_v28 = vmul.f32 %v367_v9, %v2566_v22  ;;  %v350_v16 = vmul.f32 %v349_v13, %v2566_v22 }
  0xb2   :  { %s2473_s13 = sld [smem:[#allocation6 + $0x10d]]  ;;  %v449_v3 = vmul.f32 %v448_v17, %v2566_v22  ;;  %v467_v11 = vmul.f32 %v466_v25, %v2566_v22  ;;  %v377_v15 = vmul.f32 %v376_v29, %v2566_v22  ;;  %v482_v9 = vmul.f32 %v481_v32, %v2526_v55 }
  0xb3   :  { %v250_v62 = vstv %s3382_s0  ;;  %s2482_s25 = sld [smem:[#allocation6 + $0x9e]]  ;;  %v383_v13 = vmul.f32 %v382_v36, %v2526_v55  ;;  %v351_v17 = vadd.f32 %v350_v16, %v348_v10  ;;  %v485_v25 = vmul.f32 %v484_v33, %v2566_v22 }
  0xb4   :  { %3383 = sst [smem:[#allocation45_spill]] %s2457_s8  ;;  %v450_v34 = vadd.f32 %v449_v3, %v447_v63  ;;  %v375_v3 = vadd.f32 %v374_v12, %v2412_v27  ;;  %v483_v50 = vadd.f32 %v482_v9, %v2420_v31 }
  0xb5   :  { %v418_v2 = vstv %s3384_s19  ;;  %s2490_s28 = sld [smem:[#allocation6 + $0x11e]]  ;;  %v352_v36 = vsel %vm197_vm2, %v351_v17, -inf  ;;  %v384_v12 = vadd.f32 %v383_v13, %v2428_v35  ;;  %v212_v35 = vmul.f32 %v211_v44, %v2526_v55 }
  0xb6   :  { %s2498_s4 = sld [smem:[#allocation6 + $0xf]]  ;;  %v537_v10 = vsel %vm3317_vm3, %v352_v36, -inf  ;;  %v451_v27 = vsel %vm197_vm2, %v450_v34, -inf  ;;  %v486_v16 = vadd.f32 %v485_v25, %v483_v50  ;;  %v395_v13 = vmul.f32 %v394_v41, %v2566_v22 }
  0xb7   :  { %v470_v14 = vstv %s2465_s20  ;;  %s2536_s16 = sld [smem:[#allocation6]]  ;;  %538 = vmax.xlane.f32.xlu1 %v537_v10  ;;  %v215_v44 = vmul.f32 %v214_v45, %v2566_v22  ;;  %v410_v36 = vmul.f32 %v409_v57, %v2526_v55  ;;  %v248_v57 = vmul.f32 %v247_v61, %v2526_v55 }
  0xb8   :  { %v2553_v54 = vmul.f32 %v470_v14, %v2254_v1  ;;  %s2563_s5 = sld [smem:[#allocation6 + $0x8f]]  ;;  %v366_v14 = vadd.f32 %v365_v38, %v2372_v7  ;;  %v359_v7 = vmul.f32 %v358_v21, %v2566_v22  ;;  %v465_v21 = vadd.f32 %v464_v8, %v2404_v23 }
  0xb9   :  { %s2572_s30 = sld [smem:[#allocation6 + $0x10f]]  ;;  %v386_v23 = vmul.f32 %v385_v37, %v2566_v22  ;;  %v378_v8 = vadd.f32 %v377_v15, %v375_v3  ;;  %v487_v41 = vsel %vm197_vm2, %v486_v16, -inf }
  0xba   :  { %v369_v19 = vadd.f32 %v368_v28, %v366_v14  ;;  %v360_v46 = vadd.f32 %v359_v7, %v357_v24  ;;  %s2600_s17 = sld [smem:[#allocation6 + $0x100]]  ;;  %v468_v63 = vadd.f32 %v467_v11, %v465_v21  ;;  %v392_v28 = vmul.f32 %v391_v40, %v2526_v55 }
  0xbb   :  { %s2610_s7 = sld [smem:[#allocation6 + $0x2]]  ;;  %v387_v24 = vadd.f32 %v386_v23, %v384_v12  ;;  %v570_v11 = vsel %vm3317_vm3, %v451_v27, -inf  ;;  %v379_v40 = vsel %vm197_vm2, %v378_v8, -inf  ;;  %v411_v8 = vadd.f32 %v410_v36, %v2468_v56 }
  0xbc   :  { %v335_v20 = vstv %s2498_s4  ;;  %s2586_s4 = sld [smem:[#allocation6 + $0x80]]  ;;  %v370_v32 = vsel %vm197_vm2, %v369_v19, -inf  ;;  %v361_v37 = vsel %vm197_vm2, %v360_v46, -inf  ;;  %v469_v9 = vsel %vm197_vm2, %v468_v63, -inf }
  0xbd   :  { %v2607_v29 = vmul.f32 %v335_v20, %v2254_v1  ;;  %v198_v38 = vstv %s2536_s16  ;;  %v543_v33 = vsel %vm3317_vm3, %v370_v32, -inf  ;;  %s2623_s1 = sld [smem:[#allocation6 + $0x82]]  ;;  %v540_v15 = vsel %vm3317_vm3, %v361_v37, -inf }
  0xbe   :  { %544 = vmax.xlane.f32.xlu0 %v543_v33  ;;  %s2630_s22 = sld [smem:[#allocation6 + $0x102]]  ;;  %v337_v31 = vstv %s2563_s5  ;;  %v2635_v14 = vmul.f32 %v198_v38, %v2254_v1  ;;  %541 = vmax.xlane.f32.xlu1 %v540_v15  ;;  %v401_v19 = vmul.f32 %v400_v48, %v2526_v55  ;;  %v393_v34 = vadd.f32 %v392_v28, %v2436_v39 }
  0xbf   :  { %3402 = sst [smem:[#allocation40_spill]] %s2572_s30  ;;  %v340_v20 = vstv %s2572_s30  ;;  %v230_v46 = vmul.f32 %v229_v52, %v2526_v55  ;;  %v576_v25 = vsel %vm3317_vm3, %v469_v9, -inf  ;;  %v388_v45 = vsel %vm197_vm2, %v387_v24, -inf }
  0xc0   :  { %s2637_s15 = sld [smem:[#allocation6 + $0x8]]  ;;  %v203_v17 = vstv %s2600_s17  ;;  %v213_v48 = vadd.f32 %v212_v35, %v2444_v43  ;;  %v404_v38 = vmul.f32 %v403_v49, %v2566_v22  ;;  %v546_v39 = vsel %vm3317_vm3, %v379_v40, -inf  ;;  %s2186_s17 = smov 16  }
  0xc1   :  { %s2646_s20 = sld [smem:[#allocation6 + $0xa]]  ;;  %v218_v21 = vstv %s2610_s7  ;;  %v396_v32 = vadd.f32 %v395_v13, %v393_v34  ;;  %v233_v52 = vmul.f32 %v232_v53, %v2566_v22  ;;  %v402_v43 = vadd.f32 %v401_v19, %v2452_v47 }
  0xc2   :  { %v200_v7 = vstv %s2586_s4  ;;  %s2655_s30 = sld [smem:[#allocation6 + $0x88]]  ;;  %571 = vmax.xlane.f32.xlu0 %v570_v11  ;;  %547 = vmax.xlane.f32.xlu1 %v546_v39  ;;  %v216_v3 = vadd.f32 %v215_v44, %v213_v48  ;;  %v231_v49 = vadd.f32 %v230_v46, %v2460_v51  ;;  %v413_v53 = vmul.f32 %v412_v58, %v2566_v22 }
  0xc3   :  { %s2666_s16 = sld [smem:[#allocation6 + $0x108]]  ;;  %v220_v23 = vstv %s2623_s1  ;;  %v582_v63 = vsel %vm3317_vm3, %v487_v41, -inf  ;;  %v549_v50 = vsel %vm3317_vm3, %v388_v45, -inf  ;;  %v405_v47 = vadd.f32 %v404_v38, %v402_v43 }
  0xc4   :  { %v223_v33 = vstv %s2630_s22  ;;  %s2692_s23 = sld [smem:[#allocation6 + $0xc]]  ;;  %v397_v37 = vsel %vm197_vm2, %v396_v32, -inf  ;;  %v234_v51 = vadd.f32 %v233_v52, %v231_v49  ;;  %v251_v58 = vmul.f32 %v250_v62, %v2566_v22 }
  0xc5   :  { %v217_v61 = vsel %vm197_vm2, %v216_v3, -inf  ;;  %s2718_s12 = sld [smem:[#allocation6 + $0x8a]]  ;;  %v414_v28 = vadd.f32 %v413_v53, %v411_v8  ;;  %v249_v56 = vadd.f32 %v248_v57, %v2477_v60  ;;  %v419_v62 = vmul.f32 %v418_v2, %v2526_v55 }
  0xc6   :  { %577 = vmax.xlane.f32.xlu0 %v576_v25  ;;  %v272_v10 = vstv %s2637_s15  ;;  %550 = vmax.xlane.f32.xlu1 %v549_v50  ;;  %s3410_s18 = sld [smem:[#allocation50_spill]]  ;;  %v552_v11 = vsel %vm3317_vm3, %v397_v37, -inf  ;;  %v406_v15 = vsel %vm197_vm2, %v405_v47, -inf  ;;  %v3411_v9 = vstv %s3385_s26 }
  0xc7   :  { %v290_v27 = vstv %s2646_s20  ;;  %v2714_v12 = vmul.f32 %v272_v10, %v2254_v1  ;;  %s2724_s21 = sld [smem:[#allocation6 + $0x10a]]  ;;  %v422_v60 = vmul.f32 %v3411_v9, %v2566_v22  ;;  %v3412_v13 = vstv %s2350_s9 }
  0xc8   :  { %v274_v16 = vstv %s2655_s30  ;;  %v2727_v35 = vmul.f32 %v290_v27, %v2254_v1  ;;  %v266_v40 = vmul.f32 %v3412_v13, %v2526_v55  ;;  %s3413_s24 = sld [smem:[#allocation51_spill]]  ;;  %v492_v2 = vsel %vm3317_vm3, %v217_v61, -inf }
  0xc9   :  { %v277_v24 = vstv %s2666_s16  ;;  %s2738_s14 = sld [smem:[#allocation6 + $0xe]]  ;;  %v235_v44 = vsel %vm197_vm2, %v234_v51, -inf  ;;  %v252_v19 = vadd.f32 %v251_v58, %v249_v56  ;;  %v3414_v41 = vstv %s2356_s3 }
  0xca   :  { %583 = vmax.xlane.f32.xlu0 %v582_v63  ;;  %v428_v34 = vmul.f32 %v3414_v41, %v2526_v55  ;;  %s2746_s0 = sld [smem:[#allocation6 + $0x8c]]  ;;  %553 = vmax.xlane.f32.xlu1 %v552_v11  ;;  %v3417_v45 = vstv %s2364_s27  ;;  %v3418_v38 = vstv %s2385_s10  ;;  %v308_v32 = vstv %s2692_s23 }
  0xcb   :  { %s3415_s26 = sld [smem:[#allocation32_spill]]  ;;  %v284_v48 = vmul.f32 %v3417_v45, %v2526_v55  ;;  %v437_v39 = vmul.f32 %v3418_v38, %v2526_v55  ;;  %v555_v52 = vsel %vm3317_vm3, %v406_v15, -inf  ;;  %v420_v36 = vadd.f32 %v419_v62, %v2485_v0 }
  0xcc   :  { %v3416_v46 = vstv %s3410_s18  ;;  %s3419_s9 = sld [smem:[#allocation37_spill]]  ;;  %v3421_v49 = vstv %s2409_s11  ;;  %v498_v57 = vsel %vm3317_vm3, %v235_v44, -inf  ;;  %v267_v10 = vadd.f32 %v266_v40, %v2493_v6 }
  0xcd   :  { %v269_v25 = vmul.f32 %v3416_v46, %v2566_v22  ;;  %s2757_s19 = sld [smem:[#allocation6 + $0x10c]]  ;;  %v302_v53 = vmul.f32 %v3421_v49, %v2526_v55  ;;  %v3422_v63 = vstv %s2369_s6  ;;  %v415_v27 = vsel %vm197_vm2, %v414_v28, -inf }
  0xce   :  { %493 = vmax.xlane.f32.xlu0 %v492_v2  ;;  %v3420_v3 = vstv %s3413_s24  ;;  %s2768_s3 = sld [smem:[#allocation6 + $0x8e]]  ;;  %v287_v50 = vmul.f32 %v3422_v63, %v2566_v22  ;;  %v423_v37 = vadd.f32 %v422_v60, %v420_v36  ;;  %v429_v51 = vadd.f32 %v428_v34, %v2501_v26  ;;  %556 = vmax.xlane.f32.xlu1 %v555_v52 }
  0xcf   :  { %v431_v43 = vmul.f32 %v3420_v3, %v2566_v22  ;;  %s3424_s11 = sld [smem:[#allocation42_spill]]  ;;  %v253_v6 = vsel %vm197_vm2, %v252_v19, -inf  ;;  %v270_v61 = vadd.f32 %v269_v25, %v267_v10  ;;  %v285_v56 = vadd.f32 %v284_v48, %v2508_v42 }
  0xd0   :  { %v438_v62 = vadd.f32 %v437_v39, %v2516_v59  ;;  %s2788_s6 = sld [smem:[#allocation6 + $0x10e]]  ;;  %v303_v26 = vadd.f32 %v302_v53, %v2521_v4  ;;  %v292_v11 = vstv %s2718_s12  ;;  %v295_v15 = vstv %s2724_s21 }
  0xd1   :  { %v3423_v47 = vstv %s3415_s26  ;;  %v432_v28 = vadd.f32 %v431_v43, %v429_v51  ;;  %s3426_s27 = sld [smem:[#allocation38_spill]]  ;;  %v288_v9 = vadd.f32 %v287_v50, %v285_v56  ;;  %v326_v2 = vstv %s2738_s14 }
  0xd2   :  { %v440_v0 = vmul.f32 %v3423_v47, %v2566_v22  ;;  %v3425_v8 = vstv %s3419_s9  ;;  %499 = vmax.xlane.f32.xlu0 %v498_v57  ;;  %v558_v42 = vsel %vm3317_vm3, %v415_v27, -inf  ;;  %v504_v59 = vsel %vm3317_vm3, %v253_v6, -inf  ;;  %s3428_s10 = sld [smem:[#allocation45_spill]] }
  0xd3   :  { %v305_v58 = vmul.f32 %v3425_v8, %v2566_v22  ;;  %v309_v19 = vmul.f32 %v308_v32, %v2254_v1  ;;  %559 = vmax.xlane.f32.xlu1 %v558_v42  ;;  %v424_v4 = vsel %vm197_vm2, %v423_v37, -inf  ;;  %v271_v41 = vsel %vm197_vm2, %v270_v61, -inf  ;;  %s2871_s5 = sld [smem:[#allocation6 + $0x6]] }
  0xd4   :  { %v441_v60 = vadd.f32 %v440_v0, %v438_v62  ;;  %v310_v25 = vstv %s2746_s0  ;;  %v433_v45 = vsel %vm197_vm2, %v432_v28, -inf  ;;  %v313_v48 = vstv %s2757_s19  ;;  %s2878_s30 = sld [smem:[#allocation6 + $0x86]] }
  0xd5   :  { %v3427_v13 = vstv %s3424_s11  ;;  %v306_v44 = vadd.f32 %v305_v58, %v303_v26  ;;  %v327_v38 = vmul.f32 %v326_v2, %v2254_v1  ;;  %v328_v39 = vstv %s2768_s3  ;;  %s2888_s4 = sld [smem:[#allocation6 + $0x106]] }
  0xd6   :  { %v455_v40 = vmul.f32 %v3427_v13, %v2526_v55  ;;  %505 = vmax.xlane.f32.xlu0 %v504_v59  ;;  %v289_v32 = vsel %vm197_vm2, %v288_v9, -inf  ;;  %v442_v52 = vsel %vm197_vm2, %v441_v60, -inf  ;;  %v561_v49 = vsel %vm3317_vm3, %v424_v4, -inf  ;;  %s3436_s22 = sld [smem:[#allocation52_spill]] }
  0xd7   :  { %v3429_v34 = vstv %s3426_s27  ;;  %v510_v53 = vsel %vm3317_vm3, %v271_v41, -inf  ;;  %v307_v57 = vsel %vm197_vm2, %v306_v44, -inf  ;;  %v3431_v10 = vstv %s2482_s25  ;;  %562 = vmax.xlane.f32.xlu1 %v561_v49  ;;  %s2838_s25 = sld [smem:[#allocation6 + $0x4]] }
  0xd8   :  { %v458_v46 = vmul.f32 %v3429_v34, %v2566_v22  ;;  %v456_v36 = vadd.f32 %v455_v40, %v2529_v18  ;;  %v3430_v3 = vstv %s3428_s10  ;;  %v473_v63 = vmul.f32 %v3431_v10, %v2526_v55  ;;  %s3437_s20 = sld [smem:[#allocation53_spill]] }
  0xd9   :  { %v320_v43 = vmul.f32 %v3430_v3, %v2526_v55  ;;  %v564_v18 = vsel %vm3317_vm3, %v433_v45, -inf  ;;  %v3432_v47 = vstv %s2473_s13  ;;  %v331_v27 = vstv %s2788_s6  ;;  %s2852_s13 = sld [smem:[#allocation6 + $0x84]] }
  0xda   :  { %511 = vmax.xlane.f32.xlu0 %v510_v53  ;;  %v459_v50 = vadd.f32 %v458_v46, %v456_v36  ;;  %v323_v0 = vmul.f32 %v3432_v47, %v2566_v22  ;;  %v516_v37 = vsel %vm3317_vm3, %v289_v32, -inf  ;;  %v567_v51 = vsel %vm3317_vm3, %v442_v52, -inf  ;;  %s3438_s23 = sld [smem:[#allocation54_spill]] }
  0xdb   :  { %v3433_v8 = vstv %s2490_s28  ;;  %v275_v6 = vmul.f32 %v274_v16, %v2526_v55  ;;  %v522_v61 = vsel %vm3317_vm3, %v307_v57, -inf  ;;  %v321_v56 = vadd.f32 %v320_v43, %v2534_v30  ;;  %565 = vmax.xlane.f32.xlu1 %v564_v18  ;;  %s2866_s28 = sld [smem:[#allocation6 + $0x104]] }
  0xdc   :  { %v476_v58 = vmul.f32 %v3433_v8, %v2566_v22  ;;  %v338_v62 = vmul.f32 %v337_v31, %v2526_v55  ;;  %v278_v28 = vmul.f32 %v277_v24, %v2566_v22  ;;  %v474_v26 = vadd.f32 %v473_v63, %v2553_v54  ;;  %s3439_s21 = sld [smem:[#allocation55_spill]] }
  0xdd   :  { %v276_v9 = vadd.f32 %v275_v6, %v2714_v12  ;;  %v293_v60 = vmul.f32 %v292_v11, %v2526_v55  ;;  %v296_v16 = vmul.f32 %v295_v15, %v2566_v22  ;;  %v460_v30 = vsel %vm197_vm2, %v459_v50, -inf  ;;  %s3440_s0 = sld [smem:[#allocation56_spill]] }
  0xde   :  { %517 = vmax.xlane.f32.xlu0 %v516_v37  ;;  %v324_v31 = vadd.f32 %v323_v0, %v321_v56  ;;  %v341_v24 = vmul.f32 %v340_v20, %v2566_v22  ;;  %v311_v54 = vmul.f32 %v310_v25, %v2526_v55  ;;  %v201_v13 = vmul.f32 %v200_v7, %v2526_v55 }
  0xdf   :  { %v279_v12 = vadd.f32 %v278_v28, %v276_v9  ;;  %v294_v11 = vadd.f32 %v293_v60, %v2727_v35  ;;  %v314_v15 = vmul.f32 %v313_v48, %v2566_v22  ;;  %v339_v40 = vadd.f32 %v338_v62, %v2607_v29  ;;  %568 = vmax.xlane.f32.xlu1 %v567_v51 }
  0xe0   :  { %v312_v2 = vadd.f32 %v311_v54, %v309_v19  ;;  %v329_v20 = vmul.f32 %v328_v39, %v2526_v55  ;;  %v332_v42 = vmul.f32 %v331_v27, %v2566_v22  ;;  %v477_v59 = vadd.f32 %v476_v58, %v474_v26 }
  0xe1   :  { %v204_v7 = vmul.f32 %v203_v17, %v2566_v22  ;;  %v280_v35 = vsel %vm197_vm2, %v279_v12, -inf  ;;  %v297_v29 = vadd.f32 %v296_v16, %v294_v11  ;;  %v325_v44 = vsel %vm197_vm2, %v324_v31, -inf }
  0xe2   :  { %523 = vmax.xlane.f32.xlu0 %v522_v61  ;;  %v342_v19 = vadd.f32 %v341_v24, %v339_v40  ;;  %v315_v4 = vadd.f32 %v314_v15, %v312_v2  ;;  %v330_v41 = vadd.f32 %v329_v20, %v327_v38  ;;  %v219_v34 = vmul.f32 %v218_v21, %v2254_v1 }
  0xe3   :  { %v236_v17 = vstv %s2838_s25  ;;  %v298_v46 = vsel %vm197_vm2, %v297_v29, -inf  ;;  %v202_v25 = vadd.f32 %v201_v13, %v2635_v14  ;;  %v221_v45 = vmul.f32 %v220_v23, %v2526_v55 }
  0xe4   :  { %v316_v48 = vsel %vm197_vm2, %v315_v4, -inf  ;;  %v333_v39 = vadd.f32 %v332_v42, %v330_v41  ;;  %v573_v38 = vsel %vm3317_vm3, %v460_v30, -inf  ;;  %v528_v21 = vsel %vm3317_vm3, %v325_v44, -inf }
  0xe5   :  { %v224_v32 = vmul.f32 %v223_v33, %v2566_v22  ;;  %v238_v52 = vstv %s2852_s13  ;;  %574 = vmax.xlane.f32.xlu1 %v573_v38  ;;  %v478_v14 = vsel %vm197_vm2, %v477_v59, -inf  ;;  %v343_v23 = vsel %vm197_vm2, %v342_v19, -inf }
  0xe6   :  { %529 = vmax.xlane.f32.xlu0 %v528_v21  ;;  %v205_v36 = vadd.f32 %v204_v7, %v202_v25  ;;  %v334_v3 = vsel %vm197_vm2, %v333_v39, -inf  ;;  %v241_v43 = vstv %s2866_s28  ;;  %v222_v49 = vadd.f32 %v221_v45, %v219_v34 }
  0xe7   :  { %v237_v53 = vmul.f32 %v236_v17, %v2254_v1  ;;  %v239_v33 = vmul.f32 %v238_v52, %v2526_v55  ;;  %v579_v57 = vsel %vm3317_vm3, %v478_v14, -inf  ;;  %v534_v10 = vsel %vm3317_vm3, %v343_v23, -inf }
  0xe8   :  { %v254_v63 = vstv %s2871_s5  ;;  %v256_v18 = vstv %s2878_s30  ;;  %v208_v50 = vsel %vm197_vm2, %v205_v36, -inf  ;;  %v225_v47 = vadd.f32 %v224_v32, %v222_v49  ;;  %v648_v49 = vld [vmem:[#allocation10 + $0x18] sm:$0xff] }
  0xe9   :  { %580 = vmax.xlane.f32.xlu1 %v579_v57  ;;  %v242_v0 = vmul.f32 %v241_v43, %v2566_v22  ;;  %v259_v27 = vstv %s2888_s4  ;;  %v240_v37 = vadd.f32 %v239_v33, %v237_v53  ;;  %v255_v51 = vmul.f32 %v254_v63, %v2254_v1  ;;  %v647_v53 = vld [vmem:[#allocation10 + $0x10] sm:$0xff]  ;;  %v646_v33 = vld [vmem:[#allocation10 + $0x8] sm:$0xff] }
  0xea   :  { %535 = vmax.xlane.f32.xlu0 %v534_v10  ;;  %v257_v8 = vmul.f32 %v256_v18, %v2526_v55  ;;  %v489_v58 = vsel %vm3317_vm3, %v208_v50, -inf  ;;  %v226_v6 = vsel %vm197_vm2, %v225_v47, -inf  ;;  %v260_v56 = vmul.f32 %v259_v27, %v2566_v22  ;;  %v645_v50 = vld [vmem:[#allocation10] sm:$0xff] }
  0xeb   :  { %v243_v61 = vadd.f32 %v242_v0, %v240_v37  ;;  %v495_v28 = vsel %vm3317_vm3, %v226_v6, -inf  ;;  %v513_v16 = vsel %vm3317_vm3, %v280_v35, -inf  ;;  %v519_v22 = vsel %vm3317_vm3, %v298_v46, -inf }
  0xec   :  { %v258_v62 = vadd.f32 %v257_v8, %v255_v51  ;;  %v525_v30 = vsel %vm3317_vm3, %v316_v48, -inf  ;;  %v531_v31 = vsel %vm3317_vm3, %v334_v3, -inf  ;;  %v2187_v57 = vmov 0.0  }
  0xed   :  { %490 = vmax.xlane.f32.xlu1 %v489_v58  ;;  %v244_v26 = vsel %vm197_vm2, %v243_v61, -inf  ;;  %1924 = vmatprep.subr.mxu1 %v2187_v57  ;;  %v2954_v10 = vand.u32 4294901760, %v648_v49  ;;  %v2956_v63 = vand.u32 4294901760, %v647_v53  ;;  %v2958_v18 = vand.u32 4294901760, %v646_v33 }
  0xee   :  { %v261_v9 = vadd.f32 %v260_v56, %v258_v62  ;;  %v501_v1 = vsel %vm3317_vm3, %v244_v26, -inf  ;;  %1913 = vmatprep.subr.mxu0 %v2187_v57  ;;  %v2962_v27 = vand.u32 4294901760, %v645_v50 }
  0xef   :  { %v2970_v51 = vsub.f32 %v648_v49, %v2954_v10  ;;  %v2973_v8 = vsub.f32 %v647_v53, %v2956_v63  ;;  %v2976_v58 = vsub.f32 %v646_v33, %v2958_v18  ;;  %1914 = vmatpush3.msra.mxu0 %v2954_v10  ;;  %v1152_v49 = vld [vmem:[#allocation12 + $0x38] sm:$0xff]  ;;  %v1151_v53 = vld [vmem:[#allocation12 + $0x30] sm:$0xff]  ;;  %v1150_v33 = vld [vmem:[#allocation12 + $0x28] sm:$0xff] }
  0xf0   :  { %v262_v55 = vsel %vm197_vm2, %v261_v9, -inf  ;;  %vm609_vm2 = vcmask 105472   ;;  %v2981_v61 = vsub.f32 %v645_v50, %v2962_v27  ;;  %1915 = vmatprep.subr.mxu0 %v2187_v57 }
  0xf1   :  { %496 = vmax.xlane.f32.xlu1 %v495_v28  ;;  %v507_v60 = vsel %vm3317_vm3, %v262_v55, -inf  ;;  %vm2188_vm3 = vmmov 0   ;;  %v765_v62 = vand.u32 4294901760, %v2970_v51  ;;  %v772_v28 = vand.u32 4294901760, %v2973_v8  ;;  %1916 = vmatpush3.msra.mxu0 %v2956_v63 }
  0xf2   :  { %1932 = vmatprep.mubr.msk.f32.mxu1 %vm2188_vm3, %v2187_v57  ;;  %1921 = vmatprep.mubr.msk.f32.mxu0 %vm2188_vm3, %v2187_v57  ;;  %v779_v26 = vand.u32 4294901760, %v2976_v58 }
  0xf3   :  { %1917 = vmatprep.subr.mxu0 %v2187_v57 }
  0xf4   :  { %1918 = vmatpush3.msra.mxu0 %v2958_v18 }
  0xf5   :  { %502 = vmax.xlane.f32.xlu1 %v501_v1  ;;  %v786_v1 = vand.u32 4294901760, %v2981_v61  ;;  %1919 = vmatprep.subr.mxu0 %v2187_v57 }
  0xf6   :  { %1920 = vmatpush3.msra.mxu0 %v2962_v27 }
  0xf7   :  { %1935 = vmatprep.subr.mxu0 %v2187_v57 }
  0xf9   :  { %508 = vmax.xlane.f32.xlu1 %v507_v60  ;;  %v766_v60 = vsub.f32 %v2970_v51, %v765_v62 }
  0xfd   :  { %514 = vmax.xlane.f32.xlu1 %v513_v16  ;;  %v773_v16 = vsub.f32 %v2973_v8, %v772_v28 }
 0x101   :  { %520 = vmax.xlane.f32.xlu1 %v519_v22  ;;  %v780_v22 = vsub.f32 %v2976_v58, %v779_v26 }
 0x105   :  { %526 = vmax.xlane.f32.xlu1 %v525_v30 }
 0x109   :  { %532 = vmax.xlane.f32.xlu1 %v531_v31  ;;  %v767_v31 = vand.u32 4294901760, %v766_v60 }
 0x10b   :  { %1925 = vmatpush3.msra.mxu1 %v767_v31 }
 0x10c   :  { %1926 = vmatprep.subr.mxu1 %v2187_v57 }
 0x140   :  { %v539_v24 = vpop.xlane.xlu1 %538 }
 0x147   :  { %v542_v54 = vpop.xlane.xlu1 %541  ;;  %v545_v12 = vpop.xlane.xlu0 %544 }
 0x148   :  { %v613_v42 = vsel %vm585_vm4, %v539_v24, %v542_v54  ;;  %v774_v24 = vand.u32 4294901760, %v773_v16  ;;  %v787_v54 = vsub.f32 %v2981_v61, %v786_v1  ;;  %v1146_v16 = vld [vmem:[#allocation12 + $0x8] sm:$0xff] }
 0x149   :  { %v614_v7 = vsel %vm587_vm5, %v613_v42, %v545_v12 }
 0x14a   :  { %1927 = vmatpush3.msra.mxu1 %v774_v24 }
 0x14b   :  { %v548_v13 = vpop.xlane.xlu1 %547  ;;  %v572_v15 = vpop.xlane.xlu0 %571  ;;  %1928 = vmatprep.subr.mxu1 %v2187_v57 }
 0x14c   :  { %v615_v35 = vsel %vm589_vm6, %v614_v7, %v548_v13 }
 0x14f   :  { %v551_v5 = vpop.xlane.xlu1 %550  ;;  %v578_v20 = vpop.xlane.xlu0 %577 }
 0x150   :  { %v616_v44 = vsel %vm591_vm7, %v615_v35, %v551_v5 }
 0x153   :  { %v554_v11 = vpop.xlane.xlu1 %553  ;;  %v584_v29 = vpop.xlane.xlu0 %583 }
 0x154   :  { %v617_v19 = vsel %vm593_vm8, %v616_v44, %v554_v11  ;;  %v781_v11 = vand.u32 4294901760, %v780_v22  ;;  %v1145_v22 = vld [vmem:[#allocation12] sm:$0xff] }
 0x155   :  { %v3118_v31 = vand.u32 4294901760, %v1145_v22 }
 0x156   :  { %1929 = vmatpush3.msra.mxu1 %v781_v11 }
 0x157   :  { %v557_v40 = vpop.xlane.xlu1 %556  ;;  %v494_v45 = vpop.xlane.xlu0 %493  ;;  %1930 = vmatprep.subr.mxu1 %v2187_v57 }
 0x158   :  { %v618_v41 = vsel %vm595_vm9, %v617_v19, %v557_v40  ;;  %v788_v40 = vand.u32 4294901760, %v787_v54 }
 0x15a   :  { %1931 = vmatpush3.msra.mxu1 %v788_v40 }
 0x15b   :  { %v500_v32 = vpop.xlane.xlu0 %499  ;;  %1946 = vmatprep.subr.mxu1 %v2187_v57 }
 0x15c   :  { %v560_v2 = vpop.xlane.xlu1 %559 }
 0x15d   :  { %v619_v34 = vsel %vm597_vm10, %v618_v41, %v560_v2 }
 0x15f   :  { %v506_v43 = vpop.xlane.xlu0 %505 }
 0x160   :  { %v563_v59 = vpop.xlane.xlu1 %562 }
 0x161   :  { %v620_v17 = vsel %vm599_vm11, %v619_v34, %v563_v59 }
 0x163   :  { %v512_v56 = vpop.xlane.xlu0 %511 }
 0x164   :  { %v566_v4 = vpop.xlane.xlu1 %565 }
 0x165   :  { %v621_v46 = vsel %vm601_vm12, %v620_v17, %v566_v4 }
 0x167   :  { %v518_v5 = vpop.xlane.xlu0 %517 }
 0x168   :  { %v569_v25 = vpop.xlane.xlu1 %568 }
 0x169   :  { %v622_v48 = vsel %vm603_vm13, %v621_v46, %v569_v25 }
 0x16a   :  { %v623_v39 = vsel %vm605_vm14, %v622_v48, %v572_v15 }
 0x16b   :  { %v524_v59 = vpop.xlane.xlu0 %523 }
 0x16e   :  { %v575_v38 = vpop.xlane.xlu1 %574 }
 0x16f   :  { %v624_v21 = vsel %vm607_vm15, %v623_v39, %v575_v38  ;;  %v530_v19 = vpop.xlane.xlu0 %529  ;;  %v1824_v39 = vld [vmem:[%s3436_s22] ss:$0 sm:$0xff] }
 0x170   :  { %v625_v52 = vsel %vm609_vm2, %v624_v21, %v578_v20 }
 0x172   :  { %v581_v14 = vpop.xlane.xlu1 %580 }
 0x173   :  { %v626_v23 = vsel %vm94_vm1, %v625_v52, %v581_v14  ;;  %v536_v46 = vpop.xlane.xlu0 %535 }
 0x174   :  { %v627_v36 = vsel %vm89_vm0, %v626_v23, %v584_v29 }
 0x175   :  { %629 = vrot.lane.b32.xlu1 %v627_v36, %s2186_s17 }
 0x176   :  { %v491_v3 = vpop.xlane.xlu1 %490 }
 0x177   :  { %v586_v47 = vsel %vm585_vm4, %v491_v3, %v494_v45 }
 0x17a   :  { %v497_v0 = vpop.xlane.xlu1 %496 }
 0x17b   :  { %v588_v37 = vsel %vm587_vm5, %v586_v47, %v497_v0  ;;  %vm633_vm5 = vcmask 261120  }
 0x17c   :  { %v590_v6 = vsel %vm589_vm6, %v588_v37, %v500_v32  ;;  %vm3435_vm6 = vcmask 130048  }
 0x17e   :  { %v503_v9 = vpop.xlane.xlu1 %502 }
 0x17f   :  { %v592_v55 = vsel %vm591_vm7, %v590_v6, %v503_v9  ;;  %v1147_v9 = vld [vmem:[#allocation12 + $0x10] sm:$0xff] }
 0x180   :  { %v594_v30 = vsel %vm593_vm8, %v592_v55, %v506_v43  ;;  %v3114_v60 = vand.u32 4294901760, %v1147_v9 }
 0x182   :  { %v509_v13 = vpop.xlane.xlu1 %508 }
 0x183   :  { %v596_v12 = vsel %vm595_vm9, %v594_v30, %v509_v13  ;;  %v3116_v30 = vand.u32 4294901760, %v1146_v16  ;;  %v3127_v13 = vsub.f32 %v1147_v9, %v3114_v60 }
 0x184   :  { %v598_v15 = vsel %vm597_vm10, %v596_v12, %v512_v56  ;;  %v3134_v12 = vsub.f32 %v1145_v22, %v3118_v31 }
 0x185   :  { %v1301_v40 = vand.u32 4294901760, %v3127_v13 }
 0x186   :  { %v515_v2 = vpop.xlane.xlu1 %514 }
 0x187   :  { %v600_v20 = vsel %vm599_vm11, %v598_v15, %v515_v2 }
 0x188   :  { %v602_v42 = vsel %vm601_vm12, %v600_v20, %v518_v5  ;;  %v3131_v5 = vsub.f32 %v1146_v16, %v3116_v30 }
 0x18a   :  { %v521_v7 = vpop.xlane.xlu1 %520  ;;  %v1308_v2 = vand.u32 4294901760, %v3131_v5 }
 0x18b   :  { %v604_v35 = vsel %vm603_vm13, %v602_v42, %v521_v7  ;;  %v1315_v7 = vand.u32 4294901760, %v3134_v12 }
 0x18c   :  { %v606_v29 = vsel %vm605_vm14, %v604_v35, %v524_v59  ;;  %v1302_v59 = vsub.f32 %v3127_v13, %v1301_v40 }
 0x18e   :  { %v527_v44 = vpop.xlane.xlu1 %526 }
 0x18f   :  { %v608_v4 = vsel %vm607_vm15, %v606_v29, %v527_v44  ;;  %v1309_v44 = vsub.f32 %v3131_v5, %v1308_v2 }
 0x190   :  { %v610_v41 = vsel %vm609_vm2, %v608_v4, %v530_v19  ;;  %v1303_v19 = vand.u32 4294901760, %v1302_v59  ;;  %v1316_v4 = vsub.f32 %v3134_v12, %v1315_v7 }
 0x192   :  { %v533_v34 = vpop.xlane.xlu1 %532 }
 0x193   :  { %v611_v17 = vsel %vm94_vm1, %v610_v41, %v533_v34  ;;  %v1310_v41 = vand.u32 4294901760, %v1309_v44  ;;  %v1317_v34 = vand.u32 4294901760, %v1316_v4 }
 0x194   :  { %v612_v25 = vsel %vm89_vm0, %v611_v17, %v536_v46  ;;  %vm1160_vm0 = vcmask 523264  }
 0x1e7   :  { %v630_v45 = vpop.permute.xlu1 %629 }
 0x1e8   :  { %v632_v48 = vsel %vm3435_vm6, %v612_v25, %v630_v45 }
 0x1e9   :  { %634 = vst.msk [vmem:[#allocation4] sm:$0xff] %vm633_vm5, %v632_v48 }
 0x1f0   :  { %v635_v38 = vld [vmem:[#allocation4] sm:$0xff] }
 0x1f1   :  { %v643_v21 = vadd.f32 %v1824_v39, %v635_v38  ;;  %v1825_v38 = vld [vmem:[%s3437_s20] ss:$0 sm:$0xff] }
 0x1f3   :  { %v644_v32 = vmax.f32 %v643_v21, 0.0 }
 0x1f5   :  { %v657_v52 = vsel %vm633_vm5, %v644_v32, 0 }
 0x1f6   :  { %v728_v14 = vand.u32 4294901760, %v657_v52 }
 0x1f8   :  { %v729_v23 = vsub.f32 %v657_v52, %v728_v14  ;;  %1933 = vmatmul.mubr.f32.vlgmr.msra.gmra.mxu1 %v728_v14 }
 0x1f9   :  { %1947 = vmatpush3.msra.mxu1 %v2954_v10  ;;  %1954 = vmatprep.mubr.msk.f32.mxu1 %vm2188_vm3, %v2187_v57 }
 0x1fa   :  { %1948 = vmatprep.subr.mxu1 %v2187_v57  ;;  %v730_v36 = vand.u32 4294901760, %v729_v23 }
 0x1fb   :  { %1949 = vmatpush3.msra.mxu1 %v2956_v63 }
 0x1fc   :  { %1950 = vmatprep.subr.mxu1 %v2187_v57  ;;  %v731_v3 = vsub.f32 %v729_v23, %v730_v36 }
 0x1fd   :  { %1951 = vmatpush3.msra.mxu1 %v2958_v18 }
 0x1fe   :  { %1952 = vmatprep.subr.mxu1 %v2187_v57  ;;  %v732_v43 = vand.u32 4294901760, %v731_v3 }
 0x1ff   :  { %1953 = vmatpush3.msra.mxu1 %v2962_v27 }
 0x200   :  { %1955 = vmatmul.mubr.f32.vlgmr.msra.gmra.mxu1 %v730_v36  ;;  %1968 = vmatprep.subr.mxu1 %v2187_v57 }
 0x201   :  { %1922 = vmatmul.mubr.f32.vlgmr.msra.gmra.mxu0 %v732_v43  ;;  %1969 = vmatpush3.msra.mxu1 %v2954_v10  ;;  %v3074_v10 = vand.u32 4294901760, %v1152_v49 }
 0x202   :  { %1936 = vmatpush3.msra.mxu0 %v2970_v51  ;;  %1970 = vmatprep.subr.mxu1 %v2187_v57 }
 0x203   :  { %1937 = vmatprep.subr.mxu0 %v2187_v57  ;;  %1971 = vmatpush3.msra.mxu1 %v2956_v63  ;;  %v3076_v63 = vand.u32 4294901760, %v1151_v53  ;;  %v3081_v50 = vsub.f32 %v1152_v49, %v3074_v10 }
 0x204   :  { %1938 = vmatpush3.msra.mxu0 %v2973_v8  ;;  %1972 = vmatprep.subr.mxu1 %v2187_v57 }
 0x205   :  { %1939 = vmatprep.subr.mxu0 %v2187_v57  ;;  %1973 = vmatpush3.msra.mxu1 %v2958_v18  ;;  %v3078_v18 = vand.u32 4294901760, %v1150_v33  ;;  %v3084_v47 = vsub.f32 %v1151_v53, %v3076_v63 }
 0x206   :  { %1940 = vmatpush3.msra.mxu0 %v2976_v58  ;;  %1974 = vmatprep.subr.mxu1 %v2187_v57 }
 0x207   :  { %1941 = vmatprep.subr.mxu0 %v2187_v57  ;;  %1943 = vmatprep.mubr.msk.f32.mxu0 %vm2188_vm3, %v2187_v57  ;;  %v3087_v0 = vsub.f32 %v1150_v33, %v3078_v18  ;;  %v1273_v37 = vand.u32 4294901760, %v3084_v47 }
 0x208   :  { %1942 = vmatpush3.msra.mxu0 %v2981_v61  ;;  %1975 = vmatpush3.msra.mxu1 %v2962_v27  ;;  %v1266_v27 = vand.u32 4294901760, %v3081_v50 }
 0x209   :  { %1976 = vmatprep.mubr.msk.f32.mxu1 %vm2188_vm3, %v2187_v57  ;;  %1944 = vmatmul.mubr.f32.vlgmr.msra.gmra.mxu0 %v729_v23  ;;  %v1280_v51 = vand.u32 4294901760, %v3087_v0  ;;  %v1274_v58 = vsub.f32 %v3084_v47, %v1273_v37 }
 0x20a   :  { %1957 = vmatprep.subr.mxu0 %v2187_v57  ;;  %1977 = vmatmul.mubr.f32.vlgmr.msra.gmra.mxu1 %v728_v14  ;;  %v1267_v8 = vsub.f32 %v3081_v50, %v1266_v27 }
 0x20b   :  { %1958 = vmatpush3.msra.mxu0 %v765_v62  ;;  %1965 = vmatprep.mubr.msk.f32.mxu0 %vm2188_vm3, %v2187_v57  ;;  %v1281_v6 = vsub.f32 %v3087_v0, %v1280_v51  ;;  %v1275_v56 = vand.u32 4294901760, %v1274_v58 }
 0x20c   :  { %1959 = vmatprep.subr.mxu0 %v2187_v57  ;;  %1998 = vmatprep.subr.mxu1 %v2187_v57  ;;  %v1268_v61 = vand.u32 4294901760, %v1267_v8 }
 0x20d   :  { %1960 = vmatpush3.msra.mxu0 %v772_v28  ;;  %2014 = vmatprep.mubr.msk.f32.mxu1 %vm2188_vm3, %v2187_v57  ;;  %v1282_v62 = vand.u32 4294901760, %v1281_v6  ;;  %v1149_v28 = vld [vmem:[#allocation12 + $0x20] sm:$0xff] }
 0x20e   :  { %1961 = vmatprep.subr.mxu0 %v2187_v57  ;;  %1999 = vmatpush3.msra.mxu1 %v1268_v61 }
 0x20f   :  { %1962 = vmatpush3.msra.mxu0 %v779_v26  ;;  %2000 = vmatprep.subr.mxu1 %v2187_v57  ;;  %v1148_v26 = vld [vmem:[#allocation12 + $0x18] sm:$0xff] }
 0x210   :  { %1963 = vmatprep.subr.mxu0 %v2187_v57  ;;  %2001 = vmatpush3.msra.mxu1 %v1275_v56  ;;  %v3112_v55 = vand.u32 4294901760, %v1148_v26 }
 0x211   :  { %1964 = vmatpush3.msra.mxu0 %v786_v1  ;;  %2002 = vmatprep.subr.mxu1 %v2187_v57  ;;  %v3110_v1 = vand.u32 4294901760, %v1149_v28 }
 0x212   :  { %1966 = vmatmul.mubr.f32.vlgmr.msra.gmra.mxu0 %v728_v14  ;;  %1979 = vmatprep.subr.mxu0 %v2187_v57  ;;  %v3124_v54 = vsub.f32 %v1148_v26, %v3112_v55 }
 0x213   :  { %1995 = vmatprep.mubr.msk.f32.mxu0 %vm2188_vm3, %v2187_v57  ;;  %1980 = vmatpush3.msra.mxu0 %v3074_v10  ;;  %v3121_v24 = vsub.f32 %v1149_v28, %v3110_v1 }
 0x214   :  { %1981 = vmatprep.subr.mxu0 %v2187_v57  ;;  %2003 = vmatpush3.msra.mxu1 %v1282_v62  ;;  %v1294_v15 = vand.u32 4294901760, %v3124_v54 }
 0x215   :  { %1982 = vmatpush3.msra.mxu0 %v3076_v63  ;;  %2004 = vmatprep.subr.mxu1 %v2187_v57  ;;  %v1287_v11 = vand.u32 4294901760, %v3121_v24 }
 0x216   :  { %1983 = vmatprep.subr.mxu0 %v2187_v57  ;;  %v1295_v42 = vsub.f32 %v3124_v54, %v1294_v15 }
 0x217   :  { %1984 = vmatpush3.msra.mxu0 %v3078_v18  ;;  %v1288_v20 = vsub.f32 %v3121_v24, %v1287_v11 }
 0x218   :  { %1985 = vmatprep.subr.mxu0 %v2187_v57  ;;  %v1296_v29 = vand.u32 4294901760, %v1295_v42 }
 0x219   :  { %1986 = vmatpush3.msra.mxu0 %v3110_v1  ;;  %v1289_v35 = vand.u32 4294901760, %v1288_v20 }
 0x21a   :  { %1987 = vmatprep.subr.mxu0 %v2187_v57 }
 0x21b   :  { %1988 = vmatpush3.msra.mxu0 %v3112_v55  ;;  %2005 = vmatpush3.msra.mxu1 %v1289_v35 }
 0x21c   :  { %1989 = vmatprep.subr.mxu0 %v2187_v57  ;;  %2006 = vmatprep.subr.mxu1 %v2187_v57 }
 0x21d   :  { %1990 = vmatpush3.msra.mxu0 %v3114_v60  ;;  %2007 = vmatpush3.msra.mxu1 %v1296_v29 }
 0x21e   :  { %1991 = vmatprep.subr.mxu0 %v2187_v57  ;;  %2008 = vmatprep.subr.mxu1 %v2187_v57 }
 0x21f   :  { %1992 = vmatpush3.msra.mxu0 %v3116_v30  ;;  %2009 = vmatpush3.msra.mxu1 %v1303_v19 }
 0x220   :  { %1993 = vmatprep.subr.mxu0 %v2187_v57  ;;  %2010 = vmatprep.subr.mxu1 %v2187_v57 }
 0x221   :  { %1994 = vmatpush3.msra.mxu0 %v3118_v31  ;;  %2011 = vmatpush3.msra.mxu1 %v1310_v41 }
 0x222   :  { %2017 = vmatprep.subr.mxu0 %v2187_v57  ;;  %2012 = vmatprep.subr.mxu1 %v2187_v57 }
 0x223   :  { %2013 = vmatpush3.msra.mxu1 %v1317_v34 }
 0x224   :  { %2036 = vmatprep.subr.mxu1 %v2187_v57 }
 0x2b8   :  { %v825_v17 = vpop.f32.mrf.mxu1 }
 0x2ba   :  { %v1934_v46 = vpop.f32.mrf.mxu1 }
 0x2c0   :  { %v982_v25 = vpop.f32.mrf.mxu1 }
 0x2c1   :  { %v734_v45 = vpop.f32.mrf.mxu0 }
 0x2c2   :  { %v1956_v48 = vpop.f32.mrf.mxu1  ;;  %v735_v21 = vadd.f32 %v1825_v38, %v734_v45 }
 0x2c3   :  { %v1923_v39 = vpop.f32.mrf.mxu0 }
 0x2c4   :  { %v826_v14 = vadd.f32 %v825_v17, %v735_v21 }
 0x2c9   :  { %v905_v32 = vpop.f32.mrf.mxu0 }
 0x2ca   :  { %v1140_v52 = vpop.f32.mrf.mxu1  ;;  %v906_v3 = vadd.f32 %v905_v32, %v826_v14 }
 0x2cb   :  { %v1945_v23 = vpop.f32.mrf.mxu0 }
 0x2cc   :  { %v1978_v36 = vpop.f32.mrf.mxu1  ;;  %v983_v43 = vadd.f32 %v982_v25, %v906_v3 }
 0x2d2   :  { %v1065_v49 = vpop.f32.mrf.mxu0 }
 0x2d3   :  { %v1066_v53 = vadd.f32 %v1065_v49, %v983_v43 }
 0x2d4   :  { %v1967_v33 = vpop.f32.mrf.mxu0 }
 0x2d5   :  { %v1141_v8 = vadd.f32 %v1140_v52, %v1066_v53 }
 0x2d7   :  { %v1144_v58 = vmax.f32 %v1141_v8, 0.0 }
 0x2d9   :  { %v1162_v6 = vsel %vm1160_vm0, %v1144_v58, 0 }
 0x2da   :  { %v3174_v61 = vand.u32 4294901760, %v1162_v6 }
 0x2dc   :  { %v1238_v56 = vsub.f32 %v1162_v6, %v3174_v61  ;;  %2015 = vmatmul.mubr.f32.vlgmr.msra.gmra.mxu1 %v3174_v61 }
 0x2dd   :  { %2037 = vmatpush3.msra.mxu1 %v3074_v10  ;;  %2052 = vmatprep.mubr.msk.f32.mxu1 %vm2188_vm3, %v2187_v57 }
 0x2de   :  { %2038 = vmatprep.subr.mxu1 %v2187_v57  ;;  %v1239_v62 = vand.u32 4294901760, %v1238_v56 }
 0x2df   :  { %2039 = vmatpush3.msra.mxu1 %v3076_v63 }
 0x2e0   :  { %2040 = vmatprep.subr.mxu1 %v2187_v57  ;;  %v1240_v28 = vsub.f32 %v1238_v56, %v1239_v62 }
 0x2e1   :  { %2041 = vmatpush3.msra.mxu1 %v3078_v18 }
 0x2e2   :  { %2042 = vmatprep.subr.mxu1 %v2187_v57  ;;  %v1241_v26 = vand.u32 4294901760, %v1240_v28 }
 0x2e3   :  { %2043 = vmatpush3.msra.mxu1 %v3110_v1 }
 0x2e4   :  { %2044 = vmatprep.subr.mxu1 %v2187_v57  ;;  %1996 = vmatmul.mubr.f32.vlgmr.msra.gmra.mxu0 %v1241_v26 }
 0x2e5   :  { %2018 = vmatpush3.msra.mxu0 %v3081_v50  ;;  %2045 = vmatpush3.msra.mxu1 %v3112_v55 }
 0x2e6   :  { %2019 = vmatprep.subr.mxu0 %v2187_v57  ;;  %2046 = vmatprep.subr.mxu1 %v2187_v57 }
 0x2e7   :  { %2020 = vmatpush3.msra.mxu0 %v3084_v47  ;;  %2047 = vmatpush3.msra.mxu1 %v3114_v60 }
 0x2e8   :  { %2021 = vmatprep.subr.mxu0 %v2187_v57  ;;  %2048 = vmatprep.subr.mxu1 %v2187_v57 }
 0x2e9   :  { %2022 = vmatpush3.msra.mxu0 %v3087_v0  ;;  %2049 = vmatpush3.msra.mxu1 %v3116_v30 }
 0x2ea   :  { %2023 = vmatprep.subr.mxu0 %v2187_v57  ;;  %2050 = vmatprep.subr.mxu1 %v2187_v57 }
 0x2eb   :  { %2024 = vmatpush3.msra.mxu0 %v3121_v24  ;;  %2051 = vmatpush3.msra.mxu1 %v3118_v31 }
 0x2ec   :  { %2025 = vmatprep.subr.mxu0 %v2187_v57  ;;  %2053 = vmatmul.mubr.f32.vlgmr.msra.gmra.mxu1 %v1239_v62 }
 0x2ed   :  { %2074 = vmatprep.subr.mxu1 %v2187_v57  ;;  %2026 = vmatpush3.msra.mxu0 %v3124_v54  ;;  %v1827_v54 = vld [vmem:[%s3439_s21] ss:$0 sm:$0xff] }
 0x2ee   :  { %2075 = vmatpush3.msra.mxu1 %v3074_v10  ;;  %2027 = vmatprep.subr.mxu0 %v2187_v57 }
 0x2ef   :  { %2076 = vmatprep.subr.mxu1 %v2187_v57  ;;  %2028 = vmatpush3.msra.mxu0 %v3127_v13 }
 0x2f0   :  { %2077 = vmatpush3.msra.mxu1 %v3076_v63  ;;  %2029 = vmatprep.subr.mxu0 %v2187_v57 }
 0x2f1   :  { %2078 = vmatprep.subr.mxu1 %v2187_v57  ;;  %2030 = vmatpush3.msra.mxu0 %v3131_v5 }
 0x2f2   :  { %2079 = vmatpush3.msra.mxu1 %v3078_v18  ;;  %2031 = vmatprep.subr.mxu0 %v2187_v57 }
 0x2f3   :  { %2080 = vmatprep.subr.mxu1 %v2187_v57  ;;  %2032 = vmatpush3.msra.mxu0 %v3134_v12 }
 0x2f4   :  { %2033 = vmatprep.mubr.msk.f32.mxu0 %vm2188_vm3, %v2187_v57  ;;  %2081 = vmatpush3.msra.mxu1 %v3110_v1 }
 0x2f5   :  { %2034 = vmatmul.mubr.f32.vlgmr.msra.gmra.mxu0 %v1238_v56  ;;  %2055 = vmatprep.subr.mxu0 %v2187_v57 }
 0x2f6   :  { %2082 = vmatprep.subr.mxu1 %v2187_v57  ;;  %2056 = vmatpush3.msra.mxu0 %v1266_v27 }
 0x2f7   :  { %2083 = vmatpush3.msra.mxu1 %v3112_v55  ;;  %2057 = vmatprep.subr.mxu0 %v2187_v57 }
 0x2f8   :  { %2084 = vmatprep.subr.mxu1 %v2187_v57  ;;  %2058 = vmatpush3.msra.mxu0 %v1273_v37 }
 0x2f9   :  { %2085 = vmatpush3.msra.mxu1 %v3114_v60  ;;  %2059 = vmatprep.subr.mxu0 %v2187_v57 }
 0x2fa   :  { %2086 = vmatprep.subr.mxu1 %v2187_v57  ;;  %2060 = vmatpush3.msra.mxu0 %v1280_v51  ;;  %v1826_v51 = vld [vmem:[%s3438_s23] ss:$0 sm:$0xff] }
 0x2fb   :  { %2087 = vmatpush3.msra.mxu1 %v3116_v30  ;;  %2061 = vmatprep.subr.mxu0 %v2187_v57 }
 0x2fc   :  { %2088 = vmatprep.subr.mxu1 %v2187_v57  ;;  %2062 = vmatpush3.msra.mxu0 %v1287_v11  ;;  %v1828_v11 = vld [vmem:[#allocation5] ss:$0 sm:$0xff] }
 0x2fd   :  { %2089 = vmatpush3.msra.mxu1 %v3118_v31  ;;  %2090 = vmatprep.mubr.msk.f32.mxu1 %vm2188_vm3, %v2187_v57 }
 0x2fe   :  { %2063 = vmatprep.subr.mxu0 %v2187_v57  ;;  %2091 = vmatmul.mubr.f32.vlgmr.msra.gmra.mxu1 %v3174_v61 }
 0x2ff   :  { %2064 = vmatpush3.msra.mxu0 %v1294_v15  ;;  %2071 = vmatprep.mubr.msk.f32.mxu0 %vm2188_vm3, %v2187_v57 }
 0x300   :  { %2065 = vmatprep.subr.mxu0 %v2187_v57 }
 0x301   :  { %2066 = vmatpush3.msra.mxu0 %v1301_v40 }
 0x302   :  { %2067 = vmatprep.subr.mxu0 %v2187_v57 }
 0x303   :  { %2068 = vmatpush3.msra.mxu0 %v1308_v2 }
 0x304   :  { %2069 = vmatprep.subr.mxu0 %v2187_v57 }
 0x305   :  { %2070 = vmatpush3.msra.mxu0 %v1315_v7 }
 0x306   :  { %2072 = vmatmul.mubr.f32.vlgmr.msra.gmra.mxu0 %v3174_v61 }
 0x39c   :  { %v1354_v10 = vpop.f32.mrf.mxu1 }
 0x39e   :  { %v2016_v63 = vpop.f32.mrf.mxu1 }
 0x3a4   :  { %v1243_v18 = vpop.f32.mrf.mxu0 }
 0x3a5   :  { %v1244_v9 = vadd.f32 %v1826_v51, %v1243_v18 }
 0x3a6   :  { %v1997_v50 = vpop.f32.mrf.mxu0 }
 0x3a7   :  { %v1355_v57 = vadd.f32 %v1354_v10, %v1244_v9 }
 0x3ac   :  { %v1523_v47 = vpop.f32.mrf.mxu1 }
 0x3ae   :  { %v2054_v0 = vpop.f32.mrf.mxu1 }
 0x3b5   :  { %v1442_v27 = vpop.f32.mrf.mxu0 }
 0x3b6   :  { %v1443_v60 = vadd.f32 %v1442_v27, %v1355_v57 }
 0x3b7   :  { %v2035_v37 = vpop.f32.mrf.mxu0 }
 0x3b8   :  { %v1524_v16 = vadd.f32 %v1523_v47, %v1443_v60 }
 0x3be   :  { %v1697_v1 = vpop.f32.mrf.mxu1 }
 0x3c0   :  { %v2092_v55 = vpop.f32.mrf.mxu1 }
 0x3c6   :  { %v1618_v22 = vpop.f32.mrf.mxu0 }
 0x3c7   :  { %v1619_v30 = vadd.f32 %v1618_v22, %v1524_v16 }
 0x3c8   :  { %v2073_v31 = vpop.f32.mrf.mxu0 }
 0x3c9   :  { %v1698_v24 = vadd.f32 %v1697_v1, %v1619_v30 }
 0x3cb   :  { %v1701_v13 = vmax.f32 %v1698_v24, 0.0 }
 0x3cd   :  { %v1709_v5 = vmul.f32 %v1827_v54, %v1701_v13 }
 0x3cf   :  { %v1710_v12 = vsel %vm1160_vm0, %v1709_v5, 0.0 }
 0x3d0   :  { %1711 = vadd.xlane.f32.xlu0 %v1710_v12 }
 0x459   :  { %v1712_v15 = vpop.xlane.xlu0 %1711 }
 0x45a   :  { %v1720_v40 = vadd.f32 %v1828_v11, %v1712_v15 }
 0x45c   :  { %1721 = vst.msk [vmem:[%s3440_s0] sm:$0xff] %vm585_vm4, %v1720_v40 }
 0x45d   :  { %1726 = vsyncpa [#allocation7], 1 }
 0x45e   :  { %1727 = vsyncpa [#allocation11], 1 }
 0x45f   :  { %1728 = vsyncpa [#allocation8], 1 }

</bundles_post_ra>
